<compile_context>
chip_gen: v6e
topology: v6e:2x2x1
jax: 0.10.0
libtpu: 0.0.40
codegen_flags: <defaults>
</compile_context>

<pallas_src>
import functools

import jax
import jax.numpy as jnp
from jax.experimental import pallas as pl
from jax.experimental.pallas import tpu as pltpu


def ae_kernel(x_ref,
              w1_ref, b1_ref, w2_ref, b2_ref,
              w34_ref, b34_ref, w5_ref, b5_ref, w6_ref, b6_ref,
              out_ref, *, bf16_elementwise, fast_sigmoid):
    """Fused forward pass of the whole autoencoder on one batch tile."""
    x = x_ref[...]
    if x.dtype != jnp.bfloat16:
        x = x.astype(jnp.bfloat16)

    def relu_to_bf16(h):
        # h is the f32 matmul accumulator (+ bias).
        if bf16_elementwise:
            # v6e/v7x: bf16 VALU -> halve vreg traffic through the ReLU.
            return jnp.maximum(h.astype(jnp.bfloat16), 0.0)
        # v5e: no bf16 VPU; max in f32, cast after.
        return jnp.maximum(h, 0.0).astype(jnp.bfloat16)

    # ---- encoder ----
    h1 = relu_to_bf16(jnp.dot(x, w1_ref[...], preferred_element_type=jnp.float32)
                      + b1_ref[...])
    h2 = relu_to_bf16(jnp.dot(h1, w2_ref[...], preferred_element_type=jnp.float32)
                      + b2_ref[...])

    # ---- fused latent bottleneck (layers 3+4, no ReLU between them) ----
    d1 = relu_to_bf16(jnp.dot(h2, w34_ref[...], preferred_element_type=jnp.float32)
                      + b34_ref[...])

    # ---- decoder tail ----
    d2 = relu_to_bf16(jnp.dot(d1, w5_ref[...], preferred_element_type=jnp.float32)
                      + b5_ref[...])
    d3 = jnp.dot(d2, w6_ref[...], preferred_element_type=jnp.float32) + b6_ref[...]

    if fast_sigmoid:
        # exp + approx vrcp both on the EUP slot: keeps the epilogue off the VALU path.
        out = pl.reciprocal(1.0 + jnp.exp(-d3), approx=True)
    else:
        out = jax.nn.sigmoid(d3)
    out_ref[...] = out.astype(out_ref.dtype)


def _round_up(x, m):
    return (x + m - 1) // m * m


def _cdiv(a, b):
    return (a + b - 1) // b


def _device_kind():
    try:
        return jax.devices()[0].device_kind.lower()
    except Exception:
        return ""


def _vmem_capacity_bytes():
    try:
        return int(pltpu.get_tpu_info().vmem_capacity_bytes)
    except Exception:
        return 64 * 1024 * 1024  # conservative (v7x-sized) fallback


# (in, out) dims of the fused forward: 784->256->48->48->256->784.
_FUSED_DIMS = [(784, 256), (256, 48), (48, 48), (48, 256), (256, 784)]


def _vmem_limit_bytes(bt, d_in, in_bytes, out_bytes, capacity):
    io = 2 * bt * d_in * (in_bytes + out_bytes)                 # double-buffered x/out tiles
    w = sum(a * b for a, b in _FUSED_DIMS) * 2 * 2              # bf16 weights (2 bufs worst case)
    bias = sum(o for _, o in _FUSED_DIMS) * 4 * 2               # f32 biases
    inter = bt * (d_in + 2 * sum(o for _, o in _FUSED_DIMS[:-1])) * 4  # f32 intermediates (rough)
    est = io + w + bias + inter
    limit = max(est * 3 // 2 + (16 << 20), 32 << 20)            # generous headroom, >= 32 MiB
    return int(min(capacity - (4 << 20), limit))                # never (nearly) all of VMEM


def _const_spec(shape):
    """Grid-invariant block (index_map always (0,0)): single-buffer when supported."""
    index_map = lambda i: (0,) * len(shape)
    try:
        return pl.BlockSpec(shape, index_map, pipeline_mode=pl.Buffered(1))
    except Exception:
        return pl.BlockSpec(shape, index_map)


def _prepare_params(params):
    """Fuse the 48->2->48 bottleneck and cast matmul weights to bf16 once."""
    w1, b1, w2, b2, w3, b3, w4, b4, w5, b5, w6, b6 = params
    f32 = jnp.float32
    w34 = w3.astype(f32) @ w4.astype(f32)                      # (48, 48)
    b34 = b3.astype(f32) @ w4.astype(f32) + b4.astype(f32)     # (1, 48)
    bf = jnp.bfloat16
    return (w1.astype(bf), b1.astype(f32),
            w2.astype(bf), b2.astype(f32),
            w34.astype(bf), b34.astype(f32),
            w5.astype(bf), b5.astype(f32),
            w6.astype(bf), b6.astype(f32))


def ae_forward(x, params, *, batch_tile=1024, out_dtype=jnp.bfloat16):
    """Fused AE forward pass via pallas_call.

    x:      [B, 784] float32 or bfloat16
    params: tuple (w1, b1, ..., w6, b6); weights as (in, out), biases as (1, out).
    Returns [B, 784] in `out_dtype` (bf16 by default: the kernel is HBM bound, so
    bf16 x/out streams are the main perf lever).
    """
    B, D_in = x.shape
    assert D_in == 784

    kind = _device_kind()
    is_v7x = ("v7" in kind) or ("7x" in kind)
    is_v5 = "v5" in kind
    fast_elementwise = not is_v5     # bf16 VALU / EUP epilogue only on v6e/v7x

    # ---- batch-tile selection ----
    bt = min(batch_tile, _round_up(B, 16))
    if is_v7x and B > bt:
        # 2 TensorCores: keep an even number of grid steps; tiles >= 256 rows.
        steps = 2 * _cdiv(B, 2 * bt)
        bt = _round_up(_cdiv(B, steps), 16)
        if B >= 512:
            bt = max(bt, 256)
    bt = max(bt, 16)

    Bp = _round_up(B, bt)

    # bf16 input stream (kernel is HBM-roofline bound on x/out).
    x = x.astype(jnp.bfloat16)
    if Bp != B:
        x = jnp.pad(x, ((0, Bp - B), (0, 0)))
    grid = (Bp // bt,)

    prepped = _prepare_params(params)

    x_spec = pl.BlockSpec((bt, D_in), lambda i: (i, 0))
    param_specs = [_const_spec(p.shape) for p in prepped]
    out_spec = pl.BlockSpec((bt, D_in), lambda i: (i, 0))

    vmem_limit = _vmem_limit_bytes(
        bt, D_in,
        in_bytes=x.dtype.itemsize,
        out_bytes=jnp.dtype(out_dtype).itemsize,
        capacity=_vmem_capacity_bytes())

    kernel = functools.partial(ae_kernel,
                               bf16_elementwise=fast_elementwise,
                               fast_sigmoid=fast_elementwise)

    out = pl.pallas_call(
        kernel,
        out_shape=jax.ShapeDtypeStruct((Bp, D_in), out_dtype),
        grid_spec=pltpu.PrefetchScalarGridSpec(
            num_scalar_prefetch=0,
            grid=grid,
            in_specs=[x_spec] + param_specs,
            out_specs=out_spec,
        ),
        compiler_params=pltpu.CompilerParams(
            dimension_semantics=("parallel",),
            vmem_limit_bytes=vmem_limit,
        ),
    )(x, *prepped)

    if Bp != B:
        out = out[:B]
    return out


def init_params(key):
    """Deterministic synthetic parameters with the same shapes as the torch module."""
    dims = [(784, 256), (256, 48), (48, 2), (2, 48), (48, 256), (256, 784)]
    params = []
    for idx, (din, dout) in enumerate(dims):
        kw, kb = jax.random.split(jax.random.fold_in(key, idx))
        scale = 1.0 / jnp.sqrt(jnp.float32(din))  # ~ torch Linear default init scale
        w = jax.random.uniform(kw, (din, dout), jnp.float32, -scale, scale)
        b = jax.random.uniform(kb, (1, dout), jnp.float32, -scale, scale)
        params += [w, b]
    return tuple(params)


def ae_reference(x, params):
    """Plain-JAX f32 reference (unfused, full precision) for correctness checking."""
    w1, b1, w2, b2, w3, b3, w4, b4, w5, b5, w6, b6 = params
    h = jnp.maximum(x @ w1 + b1, 0.0)
    h = jnp.maximum(h @ w2 + b2, 0.0)
    z = h @ w3 + b3
    d = jnp.maximum(z @ w4 + b4, 0.0)
    d = jnp.maximum(d @ w5 + b5, 0.0)
    d = d @ w6 + b6
    return jax.nn.sigmoid(d)


if __name__ == "__main__":
    key = jax.random.PRNGKey(0)
    k_x, k_p = jax.random.split(key)

    B = 8
    x = jax.random.uniform(k_x, (B, 784), jnp.float32)   # MNIST-flat style input
    params = init_params(k_p)

    out = ae_forward(x, params)
    out = jax.block_until_ready(out)

    ref = ae_reference(x, params)
    assert out.shape == (B, 784)
    # bf16 weights/activations/IO with f32 MXU accumulation vs the f32 reference;
    # sigmoid output lives in [0, 1], so 3e-2 absolute is a comfortable bound.
    assert jnp.allclose(out.astype(jnp.float32), ref, atol=3e-2, rtol=0.0), \
        "mismatch vs reference"

    print("KERNEL_OK")
</pallas_src>

<mosaic_0001>
module attributes {stable_mosaic.version = 11 : i64} {
  func.func @ae_kernel(%arg0: i32, %arg1: memref<16x784xbf16, #tpu.memory_space<vmem>>, %arg2: memref<784x256xbf16, #tpu.memory_space<vmem>>, %arg3: memref<1x256xf32, #tpu.memory_space<vmem>>, %arg4: memref<256x48xbf16, #tpu.memory_space<vmem>>, %arg5: memref<1x48xf32, #tpu.memory_space<vmem>>, %arg6: memref<48x48xbf16, #tpu.memory_space<vmem>>, %arg7: memref<1x48xf32, #tpu.memory_space<vmem>>, %arg8: memref<48x256xbf16, #tpu.memory_space<vmem>>, %arg9: memref<1x256xf32, #tpu.memory_space<vmem>>, %arg10: memref<256x784xbf16, #tpu.memory_space<vmem>>, %arg11: memref<1x784xf32, #tpu.memory_space<vmem>>, %arg12: memref<16x784xbf16, #tpu.memory_space<vmem>>) attributes {dimension_semantics = [#tpu.dimension_semantics<parallel>], iteration_bounds = array<i64: 1>, scalar_prefetch = 0 : i64, scratch_operands = 0 : i64, tpu.core_type = #tpu.core_type<tc>, window_params = [{transform_indices = @transform_0, window_bounds = array<i64: 16, 784>}, {pipeline_mode = #tpu.pipeline_mode<synchronous>, transform_indices = @transform_1, window_bounds = array<i64: 784, 256>}, {pipeline_mode = #tpu.pipeline_mode<synchronous>, transform_indices = @transform_2, window_bounds = array<i64: 1, 256>}, {pipeline_mode = #tpu.pipeline_mode<synchronous>, transform_indices = @transform_3, window_bounds = array<i64: 256, 48>}, {pipeline_mode = #tpu.pipeline_mode<synchronous>, transform_indices = @transform_4, window_bounds = array<i64: 1, 48>}, {pipeline_mode = #tpu.pipeline_mode<synchronous>, transform_indices = @transform_5, window_bounds = array<i64: 48, 48>}, {pipeline_mode = #tpu.pipeline_mode<synchronous>, transform_indices = @transform_6, window_bounds = array<i64: 1, 48>}, {pipeline_mode = #tpu.pipeline_mode<synchronous>, transform_indices = @transform_7, window_bounds = array<i64: 48, 256>}, {pipeline_mode = #tpu.pipeline_mode<synchronous>, transform_indices = @transform_8, window_bounds = array<i64: 1, 256>}, {pipeline_mode = #tpu.pipeline_mode<synchronous>, transform_indices = @transform_9, window_bounds = array<i64: 256, 784>}, {pipeline_mode = #tpu.pipeline_mode<synchronous>, transform_indices = @transform_10, window_bounds = array<i64: 1, 784>}, {transform_indices = @transform_11, window_bounds = array<i64: 16, 784>}]} {
    %c0 = arith.constant 0 : index
    %c0_0 = arith.constant 0 : index
    %0 = vector.load %arg1[%c0, %c0_0] : memref<16x784xbf16, #tpu.memory_space<vmem>>, vector<16x784xbf16>
    %c0_1 = arith.constant 0 : index
    %c0_2 = arith.constant 0 : index
    %1 = vector.load %arg2[%c0_1, %c0_2] : memref<784x256xbf16, #tpu.memory_space<vmem>>, vector<784x256xbf16>
    %cst = arith.constant dense<0.000000e+00> : vector<16x256xf32>
    %2 = tpu.matmul %0, %1, %cst {dimension_numbers = #tpu.dot_dimension_numbers<[1], [0], [0], [1], [0, 0, 1, 1], [], []>} : vector<16x784xbf16>, vector<784x256xbf16>, vector<16x256xf32> -> vector<16x256xf32>
    %c0_3 = arith.constant 0 : index
    %c0_4 = arith.constant 0 : index
    %3 = vector.load %arg3[%c0_3, %c0_4] : memref<1x256xf32, #tpu.memory_space<vmem>>, vector<1x256xf32>
    %4 = vector.broadcast %3 : vector<1x256xf32> to vector<16x256xf32>
    %5 = arith.addf %2, %4 : vector<16x256xf32>
    %6 = arith.truncf %5 : vector<16x256xf32> to vector<16x256xbf16>
    %cst_5 = arith.constant 0.000000e+00 : bf16
    %7 = vector.broadcast %cst_5 : bf16 to vector<16x256xbf16>
    %8 = arith.maximumf %6, %7 : vector<16x256xbf16>
    %c0_6 = arith.constant 0 : index
    %c0_7 = arith.constant 0 : index
    %9 = vector.load %arg4[%c0_6, %c0_7] : memref<256x48xbf16, #tpu.memory_space<vmem>>, vector<256x48xbf16>
    %cst_8 = arith.constant dense<0.000000e+00> : vector<16x48xf32>
    %10 = tpu.matmul %8, %9, %cst_8 {dimension_numbers = #tpu.dot_dimension_numbers<[1], [0], [0], [1], [0, 0, 1, 1], [], []>} : vector<16x256xbf16>, vector<256x48xbf16>, vector<16x48xf32> -> vector<16x48xf32>
    %c0_9 = arith.constant 0 : index
    %c0_10 = arith.constant 0 : index
    %11 = vector.load %arg5[%c0_9, %c0_10] : memref<1x48xf32, #tpu.memory_space<vmem>>, vector<1x48xf32>
    %12 = vector.broadcast %11 : vector<1x48xf32> to vector<16x48xf32>
    %13 = arith.addf %10, %12 : vector<16x48xf32>
    %14 = arith.truncf %13 : vector<16x48xf32> to vector<16x48xbf16>
    %cst_11 = arith.constant 0.000000e+00 : bf16
    %15 = vector.broadcast %cst_11 : bf16 to vector<16x48xbf16>
    %16 = arith.maximumf %14, %15 : vector<16x48xbf16>
    %c0_12 = arith.constant 0 : index
    %c0_13 = arith.constant 0 : index
    %17 = vector.load %arg6[%c0_12, %c0_13] : memref<48x48xbf16, #tpu.memory_space<vmem>>, vector<48x48xbf16>
    %cst_14 = arith.constant dense<0.000000e+00> : vector<16x48xf32>
    %18 = tpu.matmul %16, %17, %cst_14 {dimension_numbers = #tpu.dot_dimension_numbers<[1], [0], [0], [1], [0, 0, 1, 1], [], []>} : vector<16x48xbf16>, vector<48x48xbf16>, vector<16x48xf32> -> vector<16x48xf32>
    %c0_15 = arith.constant 0 : index
    %c0_16 = arith.constant 0 : index
    %19 = vector.load %arg7[%c0_15, %c0_16] : memref<1x48xf32, #tpu.memory_space<vmem>>, vector<1x48xf32>
    %20 = vector.broadcast %19 : vector<1x48xf32> to vector<16x48xf32>
    %21 = arith.addf %18, %20 : vector<16x48xf32>
    %22 = arith.truncf %21 : vector<16x48xf32> to vector<16x48xbf16>
    %cst_17 = arith.constant 0.000000e+00 : bf16
    %23 = vector.broadcast %cst_17 : bf16 to vector<16x48xbf16>
    %24 = arith.maximumf %22, %23 : vector<16x48xbf16>
    %c0_18 = arith.constant 0 : index
    %c0_19 = arith.constant 0 : index
    %25 = vector.load %arg8[%c0_18, %c0_19] : memref<48x256xbf16, #tpu.memory_space<vmem>>, vector<48x256xbf16>
    %cst_20 = arith.constant dense<0.000000e+00> : vector<16x256xf32>
    %26 = tpu.matmul %24, %25, %cst_20 {dimension_numbers = #tpu.dot_dimension_numbers<[1], [0], [0], [1], [0, 0, 1, 1], [], []>} : vector<16x48xbf16>, vector<48x256xbf16>, vector<16x256xf32> -> vector<16x256xf32>
    %c0_21 = arith.constant 0 : index
    %c0_22 = arith.constant 0 : index
    %27 = vector.load %arg9[%c0_21, %c0_22] : memref<1x256xf32, #tpu.memory_space<vmem>>, vector<1x256xf32>
    %28 = vector.broadcast %27 : vector<1x256xf32> to vector<16x256xf32>
    %29 = arith.addf %26, %28 : vector<16x256xf32>
    %30 = arith.truncf %29 : vector<16x256xf32> to vector<16x256xbf16>
    %cst_23 = arith.constant 0.000000e+00 : bf16
    %31 = vector.broadcast %cst_23 : bf16 to vector<16x256xbf16>
    %32 = arith.maximumf %30, %31 : vector<16x256xbf16>
    %c0_24 = arith.constant 0 : index
    %c0_25 = arith.constant 0 : index
    %33 = vector.load %arg10[%c0_24, %c0_25] : memref<256x784xbf16, #tpu.memory_space<vmem>>, vector<256x784xbf16>
    %cst_26 = arith.constant dense<0.000000e+00> : vector<16x784xf32>
    %34 = tpu.matmul %32, %33, %cst_26 {dimension_numbers = #tpu.dot_dimension_numbers<[1], [0], [0], [1], [0, 0, 1, 1], [], []>} : vector<16x256xbf16>, vector<256x784xbf16>, vector<16x784xf32> -> vector<16x784xf32>
    %c0_27 = arith.constant 0 : index
    %c0_28 = arith.constant 0 : index
    %35 = vector.load %arg11[%c0_27, %c0_28] : memref<1x784xf32, #tpu.memory_space<vmem>>, vector<1x784xf32>
    %36 = vector.broadcast %35 : vector<1x784xf32> to vector<16x784xf32>
    %37 = arith.addf %34, %36 : vector<16x784xf32>
    %cst_29 = arith.constant 0.000000e+00 : f32
    %38 = vector.broadcast %cst_29 : f32 to vector<16x784xf32>
    %39 = arith.subf %38, %37 : vector<16x784xf32>
    %40 = math.exp %39 : vector<16x784xf32>
    %cst_30 = arith.constant 1.000000e+00 : f32
    %41 = vector.broadcast %cst_30 : f32 to vector<16x784xf32>
    %42 = arith.addf %41, %40 : vector<16x784xf32>
    %43 = tpu.reciprocal %42 {approx = true} : vector<16x784xf32> -> vector<16x784xf32>
    %44 = arith.truncf %43 : vector<16x784xf32> to vector<16x784xbf16>
    %c0_31 = arith.constant 0 : index
    %c0_32 = arith.constant 0 : index
    %45 = vector.load %arg12[%c0_31, %c0_32] : memref<16x784xbf16, #tpu.memory_space<vmem>>, vector<16x784xbf16>
    tpu.vector_store %arg12[%c0_31, %c0_32], %44 {strides = array<i32>} : memref<16x784xbf16, #tpu.memory_space<vmem>>, vector<16x784xbf16>,
    return
  }
  func.func @transform_0(%arg0: i32) -> (i32, i32) {
    %c0_i32 = arith.constant 0 : i32
    %c0_i32_0 = arith.constant 0 : i32
    return %arg0, %c0_i32 : i32, i32
  }
  func.func @transform_1(%arg0: i32) -> (i32, i32) {
    %c0_i32 = arith.constant 0 : i32
    %c0_i32_0 = arith.constant 0 : i32
    %c0_i32_1 = arith.constant 0 : i32
    return %c0_i32, %c0_i32_0 : i32, i32
  }
  func.func @transform_2(%arg0: i32) -> (i32, i32) {
    %c0_i32 = arith.constant 0 : i32
    %c0_i32_0 = arith.constant 0 : i32
    %c0_i32_1 = arith.constant 0 : i32
    return %c0_i32, %c0_i32_0 : i32, i32
  }
  func.func @transform_3(%arg0: i32) -> (i32, i32) {
    %c0_i32 = arith.constant 0 : i32
    %c0_i32_0 = arith.constant 0 : i32
    %c0_i32_1 = arith.constant 0 : i32
    return %c0_i32, %c0_i32_0 : i32, i32
  }
  func.func @transform_4(%arg0: i32) -> (i32, i32) {
    %c0_i32 = arith.constant 0 : i32
    %c0_i32_0 = arith.constant 0 : i32
    %c0_i32_1 = arith.constant 0 : i32
    return %c0_i32, %c0_i32_0 : i32, i32
  }
  func.func @transform_5(%arg0: i32) -> (i32, i32) {
    %c0_i32 = arith.constant 0 : i32
    %c0_i32_0 = arith.constant 0 : i32
    %c0_i32_1 = arith.constant 0 : i32
    return %c0_i32, %c0_i32_0 : i32, i32
  }
  func.func @transform_6(%arg0: i32) -> (i32, i32) {
    %c0_i32 = arith.constant 0 : i32
    %c0_i32_0 = arith.constant 0 : i32
    %c0_i32_1 = arith.constant 0 : i32
    return %c0_i32, %c0_i32_0 : i32, i32
  }
  func.func @transform_7(%arg0: i32) -> (i32, i32) {
    %c0_i32 = arith.constant 0 : i32
    %c0_i32_0 = arith.constant 0 : i32
    %c0_i32_1 = arith.constant 0 : i32
    return %c0_i32, %c0_i32_0 : i32, i32
  }
  func.func @transform_8(%arg0: i32) -> (i32, i32) {
    %c0_i32 = arith.constant 0 : i32
    %c0_i32_0 = arith.constant 0 : i32
    %c0_i32_1 = arith.constant 0 : i32
    return %c0_i32, %c0_i32_0 : i32, i32
  }
  func.func @transform_9(%arg0: i32) -> (i32, i32) {
    %c0_i32 = arith.constant 0 : i32
    %c0_i32_0 = arith.constant 0 : i32
    %c0_i32_1 = arith.constant 0 : i32
    return %c0_i32, %c0_i32_0 : i32, i32
  }
  func.func @transform_10(%arg0: i32) -> (i32, i32) {
    %c0_i32 = arith.constant 0 : i32
    %c0_i32_0 = arith.constant 0 : i32
    %c0_i32_1 = arith.constant 0 : i32
    return %c0_i32, %c0_i32_0 : i32, i32
  }
  func.func @transform_11(%arg0: i32) -> (i32, i32) {
    %c0_i32 = arith.constant 0 : i32
    %c0_i32_0 = arith.constant 0 : i32
    return %arg0, %c0_i32 : i32, i32
  }
}

</mosaic_0001>

<bundles_post_ra>
// kernel: tpu_custom_call.1
= control target key start
LH: loop header
LB: loop body
LE: loop exit
PB: predicated region body
PF: predicated region fallthrough
CT: control target
= control target key end

     0   :  { %vm683_vm0 = vcmask 130048   ;;  %s3871_s0 = inlined_call_operand.vmem [shape: bf16[16,784], index: 0, kind: input, shape index: {}]   ;;  %s3872_s1 = inlined_call_operand.vmem [shape: bf16[784,256], index: 1, kind: input, shape index: {}]   ;;  %s3873_s2 = inlined_call_operand.vmem [shape: f32[1,256], index: 2, kind: input, shape index: {}]   ;;  %s3874_s3 = inlined_call_operand.vmem [shape: bf16[256,48], index: 3, kind: input, shape index: {}]   ;;  %s3875_s4 = inlined_call_operand.vmem [shape: f32[1,48], index: 4, kind: input, shape index: {}]   ;;  %s3876_s5 = inlined_call_operand.vmem [shape: bf16[48,48], index: 5, kind: input, shape index: {}]   ;;  %s3877_s6 = inlined_call_operand.vmem [shape: f32[1,48], index: 6, kind: input, shape index: {}]   ;;  %s3878_s7 = inlined_call_operand.vmem [shape: bf16[48,256], index: 7, kind: input, shape index: {}]   ;;  %s3879_s8 = inlined_call_operand.vmem [shape: f32[1,256], index: 8, kind: input, shape index: {}]   ;;  %s3880_s9 = inlined_call_operand.vmem [shape: bf16[256,784], index: 9, kind: input, shape index: {}]   ;;  %s3881_s10 = inlined_call_operand.vmem [shape: f32[1,784], index: 10, kind: input, shape index: {}]   ;;  %s3882_s11 = inlined_call_operand.hbm [shape: bf16[16,784], index: 11, kind: output, shape index: {}]  }
   0x1   :  { %v2594_v0 = vld [vmem:[%s3872_s1 + $0x74] ss:$8 sps:$4 sm:$0xff]   ;;  %v2596_v1 = vld [vmem:[%s3872_s1 + $0x70] ss:$8 sps:$4 sm:$0xff]   ;;  %v2600_v4 = vld [vmem:[%s3872_s1 + $0x64] ss:$8 sps:$4 sm:$0xff]  }
   0x2   :  { %687 = vmatprep.subr.bf16.mxu0 %v2594_v0  ;;  %v2597_v2 = vld [vmem:[%s3872_s1 + $0x174] ss:$8 sps:$4 sm:$0xff]   ;;  %v2599_v3 = vld [vmem:[%s3872_s1 + $0x170] ss:$8 sps:$4 sm:$0xff]   ;;  %v2602_v5 = vld [vmem:[%s3872_s1 + $0x60] ss:$8 sps:$4 sm:$0xff]  }
   0x3   :  { %688 = vmatpush1.bf16.msra.mxu0 %v2596_v1  ;;  %730 = vmatprep.subr.bf16.mxu1 %v2597_v2  ;;  %v2603_v6 = vld [vmem:[%s3872_s1 + $0x164] ss:$8 sps:$4 sm:$0xff]   ;;  %v2605_v7 = vld [vmem:[%s3872_s1 + $0x160] ss:$8 sps:$4 sm:$0xff]   ;;  %v2606_v8 = vld [vmem:[%s3872_s1 + $0x54] ss:$8 sps:$4 sm:$0xff]  }
   0x4   :  { %731 = vmatpush1.bf16.msra.mxu1 %v2599_v3  ;;  %689 = vmatprep.subr.bf16.mxu0 %v2600_v4  ;;  %v2608_v9 = vld [vmem:[%s3872_s1 + $0x50] ss:$8 sps:$4 sm:$0xff]   ;;  %v2609_v10 = vld [vmem:[%s3872_s1 + $0x154] ss:$8 sps:$4 sm:$0xff]   ;;  %v2612_v11 = vld [vmem:[%s3872_s1 + $0x44] ss:$8 sps:$4 sm:$0xff]  }
   0x5   :  { %732 = vmatprep.subr.bf16.mxu1 %v2603_v6  ;;  %v2611_v12 = vld [vmem:[%s3872_s1 + $0x150] ss:$8 sps:$4 sm:$0xff]   ;;  %v2615_v13 = vld [vmem:[%s3872_s1 + $0x144] ss:$8 sps:$4 sm:$0xff]   ;;  %v2614_v14 = vld [vmem:[%s3872_s1 + $0x40] ss:$8 sps:$4 sm:$0xff]  }
   0x6   :  { %v2618_v15 = vld [vmem:[%s3872_s1 + $0x34] ss:$8 sps:$4 sm:$0xff]   ;;  %v2617_v16 = vld [vmem:[%s3872_s1 + $0x140] ss:$8 sps:$4 sm:$0xff]   ;;  %v2620_v18 = vld [vmem:[%s3872_s1 + $0x30] ss:$8 sps:$4 sm:$0xff]  }
   0x7   :  { %690 = vmatpush1.bf16.msra.mxu0 %v2602_v5  ;;  %v2621_v17 = vld [vmem:[%s3872_s1 + $0x134] ss:$8 sps:$4 sm:$0xff]   ;;  %v2624_v19 = vld [vmem:[%s3872_s1 + $0x24] ss:$8 sps:$4 sm:$0xff]   ;;  %v2623_v20 = vld [vmem:[%s3872_s1 + $0x130] ss:$8 sps:$4 sm:$0xff]  }
   0x8   :  { %691 = vmatprep.subr.bf16.mxu0 %v2606_v8  ;;  %733 = vmatpush1.bf16.msra.mxu1 %v2605_v7  ;;  %v2627_v21 = vld [vmem:[%s3872_s1 + $0x124] ss:$8 sps:$4 sm:$0xff]   ;;  %v2626_v22 = vld [vmem:[%s3872_s1 + $0x20] ss:$8 sps:$4 sm:$0xff]   ;;  %v2630_v23 = vld [vmem:[%s3872_s1 + $0x14] ss:$8 sps:$4 sm:$0xff]  }
   0x9   :  { %734 = vmatprep.subr.bf16.mxu1 %v2609_v10  ;;  %v2629_v24 = vld [vmem:[%s3872_s1 + $0x120] ss:$8 sps:$4 sm:$0xff]   ;;  %v2633_v25 = vld [vmem:[%s3872_s1 + $0x114] ss:$8 sps:$4 sm:$0xff]   ;;  %v2632_v26 = vld [vmem:[%s3872_s1 + $0x10] ss:$8 sps:$4 sm:$0xff]  }
   0xa   :  { %v2636_v27 = vld [vmem:[%s3872_s1 + $0x4] ss:$8 sps:$4 sm:$0xff]   ;;  %v2635_v28 = vld [vmem:[%s3872_s1 + $0x110] ss:$8 sps:$4 sm:$0xff]   ;;  %v2638_v30 = vld [vmem:[%s3872_s1] ss:$8 sps:$4 sm:$0xff]  }
   0xb   :  { %692 = vmatpush1.bf16.msra.mxu0 %v2608_v9  ;;  %v2639_v29 = vld [vmem:[%s3872_s1 + $0x104] ss:$8 sps:$4 sm:$0xff]   ;;  %v2642_v31 = vld [vmem:[%s3872_s1 + $0xf4] ss:$8 sps:$4 sm:$0xff]   ;;  %v2641_v32 = vld [vmem:[%s3872_s1 + $0x100] ss:$8 sps:$4 sm:$0xff]  }
   0xc   :  { %693 = vmatprep.subr.bf16.mxu0 %v2612_v11  ;;  %735 = vmatpush1.bf16.msra.mxu1 %v2611_v12  ;;  %v2645_v33 = vld [vmem:[%s3872_s1 + $0x1f4] ss:$8 sps:$4 sm:$0xff]   ;;  %v2644_v34 = vld [vmem:[%s3872_s1 + $0xf0] ss:$8 sps:$4 sm:$0xff]   ;;  %v2648_v35 = vld [vmem:[%s3872_s1 + $0xe4] ss:$8 sps:$4 sm:$0xff]  }
   0xd   :  { %736 = vmatprep.subr.bf16.mxu1 %v2615_v13  ;;  %v2647_v36 = vld [vmem:[%s3872_s1 + $0x1f0] ss:$8 sps:$4 sm:$0xff]   ;;  %v2651_v37 = vld [vmem:[%s3872_s1 + $0x1e4] ss:$8 sps:$4 sm:$0xff]   ;;  %v2650_v38 = vld [vmem:[%s3872_s1 + $0xe0] ss:$8 sps:$4 sm:$0xff]  }
   0xe   :  { %v2654_v39 = vld [vmem:[%s3872_s1 + $0xd4] ss:$8 sps:$4 sm:$0xff]   ;;  %v2653_v40 = vld [vmem:[%s3872_s1 + $0x1e0] ss:$8 sps:$4 sm:$0xff]   ;;  %v2656_v42 = vld [vmem:[%s3872_s1 + $0xd0] ss:$8 sps:$4 sm:$0xff]  }
   0xf   :  { %694 = vmatpush1.bf16.msra.mxu0 %v2614_v14  ;;  %v2657_v41 = vld [vmem:[%s3872_s1 + $0x1d4] ss:$8 sps:$4 sm:$0xff]   ;;  %v2660_v43 = vld [vmem:[%s3872_s1 + $0xc4] ss:$8 sps:$4 sm:$0xff]   ;;  %v2659_v44 = vld [vmem:[%s3872_s1 + $0x1d0] ss:$8 sps:$4 sm:$0xff]  }
  0x10   :  { %695 = vmatprep.subr.bf16.mxu0 %v2618_v15  ;;  %737 = vmatpush1.bf16.msra.mxu1 %v2617_v16  ;;  %v2663_v45 = vld [vmem:[%s3872_s1 + $0x1c4] ss:$8 sps:$4 sm:$0xff]   ;;  %v2662_v46 = vld [vmem:[%s3872_s1 + $0xc0] ss:$8 sps:$4 sm:$0xff]   ;;  %v2666_v48 = vld [vmem:[%s3872_s1 + $0xb4] ss:$8 sps:$4 sm:$0xff]  }
  0x11   :  { %738 = vmatprep.subr.bf16.mxu1 %v2621_v17  ;;  %v2691_v47 = vld [vmem:[%s3871_s0 + $0x4] ss:$28 sps:$4 sm:$0xff]   ;;  %v2669_v50 = vld [vmem:[%s3872_s1 + $0x1b4] ss:$8 sps:$4 sm:$0xff]   ;;  %v2698_v51 = vld [vmem:[%s3871_s0 + $0xc] ss:$28 sps:$4 sm:$0xff]  }
  0x12   :  { %v2665_v49 = vld [vmem:[%s3872_s1 + $0x1c0] ss:$8 sps:$4 sm:$0xff]   ;;  %719 = vmatprep.mubr.bf16.mxu0 %v2691_v47  ;;  %v2668_v52 = vld [vmem:[%s3872_s1 + $0xb0] ss:$8 sps:$4 sm:$0xff]   ;;  %v2672_v53 = vld [vmem:[%s3872_s1 + $0xa4] ss:$8 sps:$4 sm:$0xff]   ;;  %762 = vmatprep.mubr.bf16.mxu1 %v2698_v51 }
  0x13   :  { %696 = vmatpush1.bf16.msra.mxu0 %v2620_v18  ;;  %v2671_v54 = vld [vmem:[%s3872_s1 + $0x1b0] ss:$8 sps:$4 sm:$0xff]   ;;  %v2675_v55 = vld [vmem:[%s3872_s1 + $0x1a4] ss:$8 sps:$4 sm:$0xff]   ;;  %v2674_v56 = vld [vmem:[%s3872_s1 + $0xa0] ss:$8 sps:$4 sm:$0xff]  }
  0x14   :  { %697 = vmatprep.subr.bf16.mxu0 %v2624_v19  ;;  %739 = vmatpush1.bf16.msra.mxu1 %v2623_v20  ;;  %v2678_v57 = vld [vmem:[%s3872_s1 + $0x94] ss:$8 sps:$4 sm:$0xff]   ;;  %v2677_v58 = vld [vmem:[%s3872_s1 + $0x1a0] ss:$8 sps:$4 sm:$0xff]   ;;  %v2680_v60 = vld [vmem:[%s3872_s1 + $0x90] ss:$8 sps:$4 sm:$0xff]  }
  0x15   :  { %740 = vmatprep.subr.bf16.mxu1 %v2627_v21  ;;  %v2681_v59 = vld [vmem:[%s3872_s1 + $0x194] ss:$8 sps:$4 sm:$0xff]   ;;  %v2684_v61 = vld [vmem:[%s3872_s1 + $0x84] ss:$8 sps:$4 sm:$0xff]   ;;  %v2683_v62 = vld [vmem:[%s3872_s1 + $0x190] ss:$8 sps:$4 sm:$0xff]  }
  0x16   :  { %v2687_v63 = vld [vmem:[%s3872_s1 + $0x184] ss:$8 sps:$4 sm:$0xff]   ;;  %v2686_v0 = vld [vmem:[%s3872_s1 + $0x80] ss:$8 sps:$4 sm:$0xff]   ;;  %v2695_v1 = vld [vmem:[%s3872_s1 + $0x274] ss:$8 sps:$4 sm:$0xff]  }
  0x17   :  { %698 = vmatpush1.bf16.msra.mxu0 %v2626_v22  ;;  %v2692_v2 = vld [vmem:[%s3872_s1 + $0x180] ss:$8 sps:$4 sm:$0xff]   ;;  %v2693_v4 = vld [vmem:[%s3872_s1 + $0x270] ss:$8 sps:$4 sm:$0xff]   ;;  %v2701_v6 = vld [vmem:[%s3872_s1 + $0x264] ss:$8 sps:$4 sm:$0xff]  }
  0x18   :  { %699 = vmatprep.subr.bf16.mxu0 %v2630_v23  ;;  %741 = vmatpush1.bf16.msra.mxu1 %v2629_v24  ;;  %v2689_v3 = vld [vmem:[%s3871_s0] ss:$28 sps:$4 sm:$0xff]   ;;  %v2696_v5 = vld [vmem:[%s3871_s0 + $0x8] ss:$28 sps:$4 sm:$0xff]   ;;  %v2702_v11 = vld [vmem:[%s3872_s1 + $0x250] ss:$8 sps:$4 sm:$0xff]  }
  0x19   :  { %742 = vmatprep.subr.bf16.mxu1 %v2633_v25  ;;  %v2741_v7 = vld [vmem:[%s3872_s1 + $0x300] ss:$8 sps:$4 sm:$0xff]   ;;  %v2743_v8 = vld [vmem:[%s3872_s1 + $0x304] ss:$8 sps:$4 sm:$0xff]   ;;  %v2704_v10 = vld [vmem:[%s3872_s1 + $0x254] ss:$8 sps:$4 sm:$0xff]  }
  0x1a   :  { %v2699_v9 = vld [vmem:[%s3872_s1 + $0x260] ss:$8 sps:$4 sm:$0xff]   ;;  %v3017_v12 = vmov 0   ;;  %v2707_v13 = vld [vmem:[%s3872_s1 + $0x244] ss:$8 sps:$4 sm:$0xff]  }
  0x1b   :  { %700 = vmatpush1.bf16.msra.mxu0 %v2632_v26  ;;  %v2747_v14 = vld [vmem:[%s3871_s0 + $0x18] ss:$28 sps:$4 sm:$0xff]   ;;  %v2705_v16 = vld [vmem:[%s3872_s1 + $0x240] ss:$8 sps:$4 sm:$0xff]   ;;  %v2713_v19 = vld [vmem:[%s3872_s1 + $0x224] ss:$8 sps:$4 sm:$0xff]  }
  0x1c   :  { %701 = vmatprep.subr.bf16.mxu0 %v2636_v27  ;;  %743 = vmatpush1.bf16.msra.mxu1 %v2635_v28  ;;  %v2750_v15 = vld [vmem:[%s3871_s0 + $0x14] ss:$28 sps:$4 sm:$0xff]   ;;  %v2711_v20 = vld [vmem:[%s3872_s1 + $0x220] ss:$8 sps:$4 sm:$0xff]   ;;  %v2719_v23 = vld [vmem:[%s3872_s1 + $0x204] ss:$8 sps:$4 sm:$0xff]  }
  0x1d   :  { %744 = vmatprep.subr.bf16.mxu1 %v2639_v29  ;;  %v2710_v17 = vld [vmem:[%s3872_s1 + $0x234] ss:$8 sps:$4 sm:$0xff]   ;;  %v2708_v18 = vld [vmem:[%s3872_s1 + $0x230] ss:$8 sps:$4 sm:$0xff]   ;;  %v2717_v24 = vld [vmem:[%s3872_s1 + $0x200] ss:$8 sps:$4 sm:$0xff]  }
  0x1e   :  { %v2716_v21 = vld [vmem:[%s3872_s1 + $0x214] ss:$8 sps:$4 sm:$0xff]   ;;  %v2714_v22 = vld [vmem:[%s3872_s1 + $0x210] ss:$8 sps:$4 sm:$0xff]   ;;  %v2725_v27 = vld [vmem:[%s3872_s1 + $0x2e4] ss:$8 sps:$4 sm:$0xff]  }
  0x1f   :  { %702 = vmatpush1.bf16.msra.mxu0 %v2638_v30  ;;  %v2722_v25 = vld [vmem:[%s3872_s1 + $0x2f4] ss:$8 sps:$4 sm:$0xff]   ;;  %v2720_v26 = vld [vmem:[%s3872_s1 + $0x2f0] ss:$8 sps:$4 sm:$0xff]   ;;  %v2723_v28 = vld [vmem:[%s3872_s1 + $0x2e0] ss:$8 sps:$4 sm:$0xff]  }
  0x20   :  { %703 = vmatprep.subr.bf16.mxu0 %v2642_v31  ;;  %745 = vmatpush1.bf16.msra.mxu1 %v2641_v32  ;;  %v2728_v29 = vld [vmem:[%s3872_s1 + $0x2d4] ss:$8 sps:$4 sm:$0xff]   ;;  %v2726_v30 = vld [vmem:[%s3872_s1 + $0x2d0] ss:$8 sps:$4 sm:$0xff]   ;;  %v2731_v31 = vld [vmem:[%s3872_s1 + $0x2c4] ss:$8 sps:$4 sm:$0xff]  }
  0x21   :  { %746 = vmatprep.subr.bf16.mxu1 %v2645_v33  ;;  %v2729_v32 = vld [vmem:[%s3872_s1 + $0x2c0] ss:$8 sps:$4 sm:$0xff]   ;;  %v2734_v33 = vld [vmem:[%s3872_s1 + $0x2b4] ss:$8 sps:$4 sm:$0xff]  }
  0x23   :  { %704 = vmatpush2.bf16.msra.mxu0 %v2644_v34  ;;  %v2732_v34 = vld [vmem:[%s3872_s1 + $0x2b0] ss:$8 sps:$4 sm:$0xff]  }
  0x24   :  { %705 = vmatprep.subr.bf16.mxu0 %v2648_v35  ;;  %747 = vmatpush2.bf16.msra.mxu1 %v2647_v36  ;;  %v2737_v35 = vld [vmem:[%s3872_s1 + $0x2a4] ss:$8 sps:$4 sm:$0xff]   ;;  %v2735_v36 = vld [vmem:[%s3872_s1 + $0x2a0] ss:$8 sps:$4 sm:$0xff]  }
  0x25   :  { %748 = vmatprep.subr.bf16.mxu1 %v2651_v37  ;;  %v2740_v37 = vld [vmem:[%s3872_s1 + $0x294] ss:$8 sps:$4 sm:$0xff]  }
  0x27   :  { %706 = vmatpush2.bf16.msra.mxu0 %v2650_v38  ;;  %v2738_v38 = vld [vmem:[%s3872_s1 + $0x290] ss:$8 sps:$4 sm:$0xff]  }
  0x28   :  { %707 = vmatprep.subr.bf16.mxu0 %v2654_v39  ;;  %749 = vmatpush2.bf16.msra.mxu1 %v2653_v40  ;;  %v2746_v39 = vld [vmem:[%s3872_s1 + $0x284] ss:$8 sps:$4 sm:$0xff]   ;;  %v2744_v40 = vld [vmem:[%s3872_s1 + $0x280] ss:$8 sps:$4 sm:$0xff]  }
  0x29   :  { %750 = vmatprep.subr.bf16.mxu1 %v2657_v41  ;;  %v2748_v41 = vld [vmem:[%s3871_s0 + $0x10] ss:$28 sps:$4 sm:$0xff]  }
  0x2b   :  { %708 = vmatpush2.bf16.msra.mxu0 %v2656_v42 }
  0x2c   :  { %709 = vmatprep.subr.bf16.mxu0 %v2660_v43  ;;  %751 = vmatpush2.bf16.msra.mxu1 %v2659_v44 }
  0x2d   :  { %752 = vmatprep.subr.bf16.mxu1 %v2663_v45 }
  0x2f   :  { %710 = vmatpush2.bf16.msra.mxu0 %v2662_v46 }
  0x30   :  { %711 = vmatprep.subr.bf16.mxu0 %v2666_v48  ;;  %753 = vmatpush2.bf16.msra.mxu1 %v2665_v49 }
  0x31   :  { %754 = vmatprep.subr.bf16.mxu1 %v2669_v50 }
  0x33   :  { %712 = vmatpush2.bf16.msra.mxu0 %v2668_v52 }
  0x34   :  { %713 = vmatprep.subr.bf16.mxu0 %v2672_v53  ;;  %755 = vmatpush2.bf16.msra.mxu1 %v2671_v54 }
  0x35   :  { %756 = vmatprep.subr.bf16.mxu1 %v2675_v55 }
  0x37   :  { %714 = vmatpush2.bf16.msra.mxu0 %v2674_v56 }
  0x38   :  { %715 = vmatprep.subr.bf16.mxu0 %v2678_v57  ;;  %757 = vmatpush2.bf16.msra.mxu1 %v2677_v58 }
  0x39   :  { %758 = vmatprep.subr.bf16.mxu1 %v2681_v59 }
  0x3b   :  { %716 = vmatpush2.bf16.msra.mxu0 %v2680_v60 }
  0x3c   :  { %717 = vmatprep.subr.bf16.mxu0 %v2684_v61  ;;  %759 = vmatpush2.bf16.msra.mxu1 %v2683_v62 }
  0x3d   :  { %760 = vmatprep.subr.bf16.mxu1 %v2687_v63 }
  0x3f   :  { %718 = vmatpush2.bf16.msra.mxu0 %v2686_v0 }
  0x40   :  { %773 = vmatprep.subr.bf16.mxu0 %v2695_v1  ;;  %761 = vmatpush2.bf16.msra.mxu1 %v2692_v2 }
  0x41   :  { %830 = vmatprep.subr.bf16.mxu1 %v2743_v8 }
  0x42   :  { %720 = vmatmul.mubr.bf16.vlgmr.msra.gmra.mxu0 %v2689_v3 }
  0x43   :  { %774 = vmatpush1.bf16.msra.mxu0 %v2693_v4  ;;  %763 = vmatmul.mubr.bf16.vlgmr.msra.gmra.mxu1 %v2696_v5 }
  0x44   :  { %775 = vmatprep.subr.bf16.mxu0 %v2701_v6  ;;  %848 = vmatprep.mubr.bf16.mxu1 %v3017_v12 }
  0x45   :  { %831 = vmatpush1.bf16.msra.mxu1 %v2741_v7  ;;  %805 = vmatprep.mubr.bf16.mxu0 %v2750_v15 }
  0x47   :  { %776 = vmatpush1.bf16.msra.mxu0 %v2699_v9 }
  0x48   :  { %777 = vmatprep.subr.bf16.mxu0 %v2704_v10 }
  0x4b   :  { %778 = vmatpush1.bf16.msra.mxu0 %v2702_v11  ;;  %2372 = vmatmul.mubr.msk.bf16.vlgmr.msra.gmra.mxu1 %vm683_vm0, %v2747_v14 }
  0x4c   :  { %779 = vmatprep.subr.bf16.mxu0 %v2707_v13 }
  0x4f   :  { %780 = vmatpush1.bf16.msra.mxu0 %v2705_v16 }
  0x50   :  { %781 = vmatprep.subr.bf16.mxu0 %v2710_v17 }
  0x53   :  { %782 = vmatpush1.bf16.msra.mxu0 %v2708_v18 }
  0x54   :  { %783 = vmatprep.subr.bf16.mxu0 %v2713_v19 }
  0x57   :  { %784 = vmatpush1.bf16.msra.mxu0 %v2711_v20 }
  0x58   :  { %785 = vmatprep.subr.bf16.mxu0 %v2716_v21 }
  0x5b   :  { %786 = vmatpush1.bf16.msra.mxu0 %v2714_v22 }
  0x5c   :  { %787 = vmatprep.subr.bf16.mxu0 %v2719_v23 }
  0x5f   :  { %788 = vmatpush1.bf16.msra.mxu0 %v2717_v24 }
  0x60   :  { %789 = vmatprep.subr.bf16.mxu0 %v2722_v25 }
  0x63   :  { %790 = vmatpush2.bf16.msra.mxu0 %v2720_v26 }
  0x64   :  { %791 = vmatprep.subr.bf16.mxu0 %v2725_v27 }
  0x67   :  { %792 = vmatpush2.bf16.msra.mxu0 %v2723_v28 }
  0x68   :  { %793 = vmatprep.subr.bf16.mxu0 %v2728_v29 }
  0x6b   :  { %794 = vmatpush2.bf16.msra.mxu0 %v2726_v30 }
  0x6c   :  { %795 = vmatprep.subr.bf16.mxu0 %v2731_v31 }
  0x6f   :  { %796 = vmatpush2.bf16.msra.mxu0 %v2729_v32 }
  0x70   :  { %797 = vmatprep.subr.bf16.mxu0 %v2734_v33 }
  0x73   :  { %798 = vmatpush2.bf16.msra.mxu0 %v2732_v34 }
  0x74   :  { %799 = vmatprep.subr.bf16.mxu0 %v2737_v35 }
  0x77   :  { %800 = vmatpush2.bf16.msra.mxu0 %v2735_v36 }
  0x78   :  { %801 = vmatprep.subr.bf16.mxu0 %v2740_v37 }
  0x7b   :  { %802 = vmatpush2.bf16.msra.mxu0 %v2738_v38 }
  0x7c   :  { %803 = vmatprep.subr.bf16.mxu0 %v2746_v39 }
  0x7f   :  { %804 = vmatpush2.bf16.msra.mxu0 %v2744_v40 }
  0x80   :  { %16 = vsyncpa [#allocation3], 0  ;;  %v2751_v42 = vld [vmem:[%s3874_s3 + $0x78] sm:$0xff]   ;;  %v2753_v44 = vld [vmem:[%s3874_s3 + $0x70] sm:$0xff]   ;;  %v148_v58 = vlaneseq  ;;  %v3018_v39 = vmov 0.0   ;;  %vm3019_vm1 = vmmov 0  }
  0x81   :  { %v2752_v43 = vld [vmem:[%s3874_s3 + $0x38] sm:$0xff]   ;;  %2530 = vmatprep.subr.bf16.mxu1 %v2751_v42  ;;  %v2754_v45 = vld [vmem:[%s3874_s3 + $0x30] sm:$0xff]   ;;  %v2755_v46 = vld [vmem:[%s3874_s3 + $0x68] sm:$0xff]   ;;  %vm1072_vm2 = vcmask 392192   ;;  %vm2245_vm3 = vcmask 125952  }
  0x82   :  { %806 = vmatmul.mubr.bf16.vlgmr.msra.gmra.mxu0 %v2748_v41  ;;  %2531 = vmatpush3.bf16.msra.mxu1 %v2752_v43  ;;  %v2756_v47 = vld [vmem:[%s3874_s3 + $0x28] sm:$0xff]   ;;  %v2757_v48 = vld [vmem:[%s3874_s3 + $0x60] sm:$0xff]   ;;  %v2759_v50 = vld [vmem:[%s3874_s3 + $0x58] sm:$0xff]   ;;  %v3447_v60 = vshrl.u32 %v148_v58, 7 }
  0x83   :  { %2532 = vmatprep.subr.bf16.mxu1 %v2753_v44  ;;  %v2758_v49 = vld [vmem:[%s3874_s3 + $0x20] sm:$0xff]   ;;  %v2760_v51 = vld [vmem:[%s3874_s3 + $0x18] sm:$0xff]   ;;  %v2761_v52 = vld [vmem:[%s3874_s3 + $0x50] sm:$0xff]  }
  0x84   :  { %v2762_v53 = vld [vmem:[%s3874_s3 + $0x10] sm:$0xff]   ;;  %v2763_v54 = vld [vmem:[%s3874_s3 + $0x48] sm:$0xff]   ;;  %v2765_v56 = vld [vmem:[%s3874_s3 + $0x40] sm:$0xff]   ;;  %v3450_v63 = vsub.s32 0, %v3447_v60  ;;  %v3456_v3 = vsub.s32 1, %v3447_v60 }
  0x85   :  { %v2764_v55 = vld [vmem:[%s3874_s3 + $0x8] sm:$0xff]   ;;  %v2766_v57 = vld [vmem:[%s3874_s3] sm:$0xff]   ;;  %v2767_v38 = vld [vmem:[%s3876_s5 + $0x10] sm:$0xff]  }
  0x86   :  { %2533 = vmatpush3.bf16.msra.mxu1 %v2754_v45  ;;  %v146_v2 = vld [vmem:[%s3873_s2] sm:$0x3]  ;;  %v2768_v40 = vld [vmem:[%s3876_s5 + $0x8] sm:$0xff]  }
  0x87   :  { %2534 = vmatprep.subr.bf16.mxu1 %v2755_v46  ;;  %v151_v4 = vrot.slane %v146_v2, %v3450_v63  ;;  %v155_v7 = vrot.slane %v146_v2, %v3456_v3  ;;  %v2769_v41 = vld [vmem:[%s3876_s5] sm:$0xff]   ;;  %v2793_v2 = vld [vmem:[%s3880_s9 + $0x11c] ss:$28 sps:$4 sm:$0xff]  }
  0x88   :  { %v2772_v42 = vld [vmem:[%s3878_s7 + $0x24] ss:$8 sps:$4 sm:$0xff]   ;;  %v2776_v58 = vld [vmem:[%s3878_s7] ss:$8 sps:$4 sm:$0xff]  }
  0x8a   :  { %2535 = vmatpush3.bf16.msra.mxu1 %v2756_v47  ;;  %v2373_v47 = vld [vmem:[%s3875_s4] ss:$0 sm:$0xff] }
  0x8b   :  { %2536 = vmatprep.subr.bf16.mxu1 %v2757_v48 }
  0x8e   :  { %2537 = vmatpush3.bf16.msra.mxu1 %v2758_v49 }
  0x8f   :  { %2538 = vmatprep.subr.bf16.mxu1 %v2759_v50 }
  0x92   :  { %2539 = vmatpush3.bf16.msra.mxu1 %v2760_v51 }
  0x93   :  { %2540 = vmatprep.subr.bf16.mxu1 %v2761_v52 }
  0x96   :  { %2541 = vmatpush3.bf16.msra.mxu1 %v2762_v53  ;;  %v2770_v53 = vld [vmem:[%s3878_s7 + $0x20] ss:$8 sps:$4 sm:$0xff]  }
  0x97   :  { %2542 = vmatprep.subr.bf16.mxu1 %v2763_v54 }
  0x9a   :  { %2543 = vmatpush3.bf16.msra.mxu1 %v2764_v55  ;;  %v2775_v55 = vld [vmem:[%s3878_s7 + $0x14] ss:$8 sps:$4 sm:$0xff]  }
  0x9b   :  { %2544 = vmatprep.subr.bf16.mxu1 %v2765_v56  ;;  %v2773_v56 = vld [vmem:[%s3878_s7 + $0x10] ss:$8 sps:$4 sm:$0xff]  }
  0x9e   :  { %2545 = vmatpush3.bf16.msra.mxu1 %v2766_v57  ;;  %v2778_v57 = vld [vmem:[%s3878_s7 + $0x4] ss:$8 sps:$4 sm:$0xff]  }
  0x9f   :  { %2578 = vmatprep.subr.bf16.mxu1 %v3018_v39 }
 0x102   :  { %v721_v61 = vpop.f32.mrf.mxu0 }
 0x103   :  { %v764_v59 = vpop.f32.mrf.mxu1  ;;  %v722_v9 = vadd.f32 %v721_v61, %v151_v4  ;;  %v2781_v61 = vld [vmem:[%s3880_s9 + $0x18c] ss:$28 sps:$4 sm:$0xff]  }
 0x104   :  { %v723_v0 = vpop.f32.mrf.mxu0  ;;  %1958 = vmatprep.subr.bf16.mxu0 %v2781_v61  ;;  %v2859_v61 = vld [vmem:[%s3880_s9 + $0x234] ss:$28 sps:$4 sm:$0xff]  }
 0x105   :  { %v766_v62 = vpop.f32.mrf.mxu1  ;;  %v724_v11 = vadd.f32 %v723_v0, %v155_v7  ;;  %v765_v17 = vadd.f32 %v764_v59, %v722_v9  ;;  %v2779_v59 = vld [vmem:[%s3880_s9 + $0x188] ss:$28 sps:$4 sm:$0xff]   ;;  %v2787_v0 = vld [vmem:[%s3880_s9 + $0x154] ss:$28 sps:$4 sm:$0xff]  }
 0x106   :  { %v725_v5 = vpop.f32.mrf.mxu0  ;;  %1959 = vmatpush1.bf16.msra.mxu0 %v2779_v59  ;;  %v2811_v9 = vld [vmem:[%s3880_s9 + $0x74] ss:$28 sps:$4 sm:$0xff]  }
 0x107   :  { %v768_v1 = vpop.f32.mrf.mxu1  ;;  %v726_v13 = vadd.f32 %v725_v5, %v151_v4  ;;  %v767_v19 = vadd.f32 %v766_v62, %v724_v11  ;;  %v2784_v62 = vld [vmem:[%s3880_s9 + $0x194] ss:$28 sps:$4 sm:$0xff]   ;;  %1960 = vmatprep.subr.bf16.mxu0 %v2787_v0  ;;  %v2799_v5 = vld [vmem:[%s3880_s9 + $0xe4] ss:$28 sps:$4 sm:$0xff]   ;;  %v2817_v11 = vld [vmem:[%s3880_s9 + $0x3c] ss:$28 sps:$4 sm:$0xff]  }
 0x108   :  { %v727_v10 = vpop.f32.mrf.mxu0  ;;  %v2791_v4 = vld [vmem:[%s3880_s9 + $0x118] ss:$28 sps:$4 sm:$0xff]   ;;  %v2854_v59 = vld [vmem:[%s3880_s9 + $0x270] ss:$28 sps:$4 sm:$0xff]  }
 0x109   :  { %v770_v6 = vpop.f32.mrf.mxu1  ;;  %v728_v16 = vadd.f32 %v727_v10, %v155_v7  ;;  %v769_v20 = vadd.f32 %v768_v1, %v726_v13  ;;  %v2785_v1 = vld [vmem:[%s3880_s9 + $0x150] ss:$28 sps:$4 sm:$0xff]   ;;  %v2815_v13 = vld [vmem:[%s3880_s9 + $0x38] ss:$28 sps:$4 sm:$0xff]  }
 0x10a   :  { %1961 = vmatpush1.bf16.msra.mxu0 %v2785_v1  ;;  %v2805_v7 = vld [vmem:[%s3880_s9 + $0xac] ss:$28 sps:$4 sm:$0xff]   ;;  %v2860_v1 = vld [vmem:[%s3880_s9 + $0x238] ss:$28 sps:$4 sm:$0xff]  }
 0x10b   :  { %v850_v8 = vpop.f32.mrf.mxu1  ;;  %v771_v24 = vadd.f32 %v770_v6, %v728_v16  ;;  %1962 = vmatprep.subr.bf16.mxu0 %v2793_v2  ;;  %v2797_v6 = vld [vmem:[%s3880_s9 + $0xe0] ss:$28 sps:$4 sm:$0xff]   ;;  %v2809_v10 = vld [vmem:[%s3880_s9 + $0x70] ss:$28 sps:$4 sm:$0xff]  }
 0x10c   :  { %v2829_v16 = vld [vmem:[%s3880_s9 + $0x34c] ss:$28 sps:$4 sm:$0xff]   ;;  %v2865_v2 = vld [vmem:[%s3880_s9 + $0x1fc] ss:$28 sps:$4 sm:$0xff]  }
 0x10d   :  { %v852_v14 = vpop.f32.mrf.mxu1  ;;  %v2857_v0 = vld [vmem:[%s3880_s9 + $0x230] ss:$28 sps:$4 sm:$0xff]  }
 0x10e   :  { %1963 = vmatpush1.bf16.msra.mxu0 %v2791_v4  ;;  %v2868_v4 = vld [vmem:[%s3880_s9 + $0x204] ss:$28 sps:$4 sm:$0xff]  }
 0x10f   :  { %v854_v22 = vpop.f32.mrf.mxu1  ;;  %1964 = vmatprep.subr.bf16.mxu0 %v2799_v5  ;;  %v2863_v5 = vld [vmem:[%s3880_s9 + $0x1f8] ss:$28 sps:$4 sm:$0xff]  }
 0x111   :  { %v856_v31 = vpop.f32.mrf.mxu1 }
 0x112   :  { %1965 = vmatpush1.bf16.msra.mxu0 %v2797_v6  ;;  %v2866_v6 = vld [vmem:[%s3880_s9 + $0x200] ss:$28 sps:$4 sm:$0xff]  }
 0x113   :  { %1966 = vmatprep.subr.bf16.mxu0 %v2805_v7  ;;  %v2871_v7 = vld [vmem:[%s3880_s9 + $0x1c4] ss:$28 sps:$4 sm:$0xff]  }
 0x142   :  { %v807_v15 = vpop.f32.mrf.mxu0 }
 0x143   :  { %v808_v21 = vadd.f32 %v807_v15, %v765_v17  ;;  %v2821_v15 = vld [vmem:[%s3880_s9] ss:$28 sps:$4 sm:$0xff]   ;;  %v2827_v17 = vld [vmem:[%s3880_s9 + $0x348] ss:$28 sps:$4 sm:$0xff]  }
 0x144   :  { %v809_v18 = vpop.f32.mrf.mxu0 }
 0x145   :  { %v810_v25 = vadd.f32 %v809_v18, %v767_v19  ;;  %v851_v30 = vadd.f32 %v850_v8, %v808_v21  ;;  %v2803_v8 = vld [vmem:[%s3880_s9 + $0xa8] ss:$28 sps:$4 sm:$0xff]   ;;  %v2835_v18 = vld [vmem:[%s3880_s9 + $0x314] ss:$28 sps:$4 sm:$0xff]  }
 0x146   :  { %v811_v23 = vpop.f32.mrf.mxu0  ;;  %1967 = vmatpush1.bf16.msra.mxu0 %v2803_v8  ;;  %v2833_v19 = vld [vmem:[%s3880_s9 + $0x310] ss:$28 sps:$4 sm:$0xff]   ;;  %v2839_v21 = vld [vmem:[%s3880_s9 + $0x2d8] ss:$28 sps:$4 sm:$0xff]  }
 0x147   :  { %v812_v26 = vadd.f32 %v811_v23, %v769_v20  ;;  %v853_v32 = vadd.f32 %v852_v14, %v810_v25  ;;  %1968 = vmatprep.subr.bf16.mxu0 %v2811_v9  ;;  %v2823_v14 = vld [vmem:[%s3880_s9 + $0x4] ss:$28 sps:$4 sm:$0xff]   ;;  %v2841_v20 = vld [vmem:[%s3880_s9 + $0x2dc] ss:$28 sps:$4 sm:$0xff]   ;;  %v2874_v8 = vld [vmem:[%s3880_s9 + $0x1cc] ss:$28 sps:$4 sm:$0xff]  }
 0x148   :  { %v813_v27 = vpop.f32.mrf.mxu0  ;;  %v2845_v23 = vld [vmem:[%s3880_s9 + $0x2a0] ss:$28 sps:$4 sm:$0xff]   ;;  %v2851_v25 = vld [vmem:[%s3880_s9 + $0x268] ss:$28 sps:$4 sm:$0xff]  }
 0x149   :  { %v855_v28 = vadd.f32 %v854_v22, %v812_v26  ;;  %v814_v29 = vadd.f32 %v813_v27, %v771_v24  ;;  %v2847_v22 = vld [vmem:[%s3880_s9 + $0x2a4] ss:$28 sps:$4 sm:$0xff]   ;;  %v2853_v24 = vld [vmem:[%s3880_s9 + $0x26c] ss:$28 sps:$4 sm:$0xff]  }
 0x14a   :  { %1969 = vmatpush1.bf16.msra.mxu0 %v2809_v10  ;;  %v2390_v27 = vld [vmem:[%s3877_s6] ss:$0 sm:$0xff]  ;;  %v2872_v10 = vld [vmem:[%s3880_s9 + $0x1c8] ss:$28 sps:$4 sm:$0xff]  }
 0x14b   :  { %v857_v33 = vadd.f32 %v856_v31, %v814_v29  ;;  %v859_v34 = vpack.c.bf16 %v855_v28, %v851_v30  ;;  %1970 = vmatprep.subr.bf16.mxu0 %v2817_v11  ;;  %v2869_v9 = vld [vmem:[%s3880_s9 + $0x1c0] ss:$28 sps:$4 sm:$0xff]  }
 0x14c   :  { %v2877_v11 = vld [vmem:[%s3880_s9 + $0x19c] ss:$28 sps:$4 sm:$0xff]  }
 0x14d   :  { %v860_v35 = vpack.c.bf16 %v857_v33, %v853_v32  ;;  %v861_v37 = vmax.bf16 %v3017_v12, %v859_v34  ;;  %v2782_v34 = vld [vmem:[%s3880_s9 + $0x190] ss:$28 sps:$4 sm:$0xff]  }
 0x14e   :  { %1971 = vmatpush1.bf16.msra.mxu0 %v2815_v13  ;;  %v2878_v13 = vld [vmem:[%s3880_s9 + $0x360] ss:$28 sps:$4 sm:$0xff]  }
 0x14f   :  { %v862_v36 = vmax.bf16 %v3017_v12, %v860_v35  ;;  %1972 = vmatprep.subr.bf16.mxu0 %v2823_v14  ;;  %v1125_v14 = vld [vmem:[%s3879_s8] sm:$0x3] }
 0x151   :  { %1030 = vmatprep.mubr.bf16.mxu1 %v862_v36  ;;  %v2790_v36 = vld [vmem:[%s3880_s9 + $0x15c] ss:$28 sps:$4 sm:$0xff]  }
 0x152   :  { %1031 = vmatmul.mubr.bf16.vlgmr.msra.gmra.mxu1 %v861_v37  ;;  %1973 = vmatpush1.bf16.msra.mxu0 %v2821_v15  ;;  %v2788_v37 = vld [vmem:[%s3880_s9 + $0x158] ss:$28 sps:$4 sm:$0xff]  }
 0x153   :  { %2579 = vmatpush3.bf16.msra.mxu1 %v2767_v38  ;;  %2584 = vmatprep.mubr.msk.bf16.mxu1 %vm3019_vm1, %v3018_v39  ;;  %v2796_v38 = vld [vmem:[%s3880_s9 + $0x124] ss:$28 sps:$4 sm:$0xff]  }
 0x154   :  { %2580 = vmatprep.subr.bf16.mxu1 %v3018_v39  ;;  %1974 = vmatprep.subr.bf16.mxu0 %v2829_v16  ;;  %v1130_v16 = vrot.slane %v1125_v14, %v3450_v63 }
 0x156   :  { %1975 = vmatpush2.bf16.msra.mxu0 %v2827_v17 }
 0x157   :  { %2581 = vmatpush3.bf16.msra.mxu1 %v2768_v40  ;;  %1976 = vmatprep.subr.bf16.mxu0 %v2835_v18  ;;  %v2802_v40 = vld [vmem:[%s3880_s9 + $0xec] ss:$28 sps:$4 sm:$0xff]   ;;  %v1134_v18 = vrot.slane %v1125_v14, %v3456_v3  ;;  %v1357_v14 = vsub.s32 2, %v3447_v60 }
 0x158   :  { %2582 = vmatprep.subr.bf16.mxu1 %v3018_v39  ;;  %v2794_v39 = vld [vmem:[%s3880_s9 + $0x120] ss:$28 sps:$4 sm:$0xff]  }
 0x15a   :  { %1977 = vmatpush2.bf16.msra.mxu0 %v2833_v19 }
 0x15b   :  { %2583 = vmatpush3.bf16.msra.mxu1 %v2769_v41  ;;  %1978 = vmatprep.subr.bf16.mxu0 %v2841_v20  ;;  %v2800_v41 = vld [vmem:[%s3880_s9 + $0xe8] ss:$28 sps:$4 sm:$0xff]  }
 0x15c   :  { %1180 = vmatprep.subr.bf16.mxu1 %v2772_v42  ;;  %v2808_v42 = vld [vmem:[%s3880_s9 + $0xb4] ss:$28 sps:$4 sm:$0xff]  }
 0x15e   :  { %1979 = vmatpush2.bf16.msra.mxu0 %v2839_v21 }
 0x15f   :  { %1980 = vmatprep.subr.bf16.mxu0 %v2847_v22 }
 0x162   :  { %1981 = vmatpush2.bf16.msra.mxu0 %v2845_v23 }
 0x163   :  { %1982 = vmatprep.subr.bf16.mxu0 %v2853_v24 }
 0x166   :  { %1983 = vmatpush2.bf16.msra.mxu0 %v2851_v25 }
 0x167   :  { %1984 = vmatprep.subr.bf16.mxu0 %v2859_v61  ;;  %v2920_v61 = vld [vmem:[%s3880_s9 + $0x324] ss:$28 sps:$4 sm:$0xff]  }
 0x16a   :  { %1985 = vmatpush2.bf16.msra.mxu0 %v2857_v0  ;;  %v2923_v0 = vld [vmem:[%s3880_s9 + $0x2ec] ss:$28 sps:$4 sm:$0xff]  }
 0x16b   :  { %1986 = vmatprep.subr.bf16.mxu0 %v2865_v2  ;;  %v2926_v2 = vld [vmem:[%s3880_s9 + $0x2b4] ss:$28 sps:$4 sm:$0xff]  }
 0x16e   :  { %1987 = vmatpush2.bf16.msra.mxu0 %v2863_v5  ;;  %v2929_v5 = vld [vmem:[%s3880_s9 + $0x27c] ss:$28 sps:$4 sm:$0xff]  }
 0x16f   :  { %1988 = vmatprep.subr.bf16.mxu0 %v2871_v7  ;;  %v2932_v7 = vld [vmem:[%s3880_s9 + $0x244] ss:$28 sps:$4 sm:$0xff]  }
 0x172   :  { %1989 = vmatpush2.bf16.msra.mxu0 %v2869_v9  ;;  %v2935_v9 = vld [vmem:[%s3880_s9 + $0x20c] ss:$28 sps:$4 sm:$0xff]  }
 0x173   :  { %2044 = vmatprep.subr.bf16.mxu0 %v2877_v11  ;;  %v2938_v11 = vld [vmem:[%s3880_s9 + $0x1d4] ss:$28 sps:$4 sm:$0xff]  }
 0x212   :  { %v2546_v43 = vpop.f32.mrf.mxu1 }
 0x214   :  { %v2547_v44 = vpop.f32.mrf.mxu1 }
 0x215   :  { %v2548_v46 = vadd.f32 %v2547_v44, %v2546_v43  ;;  %v2806_v43 = vld [vmem:[%s3880_s9 + $0xb0] ss:$28 sps:$4 sm:$0xff]   ;;  %v2814_v44 = vld [vmem:[%s3880_s9 + $0x7c] ss:$28 sps:$4 sm:$0xff]  }
 0x216   :  { %v2549_v45 = vpop.f32.mrf.mxu1 }
 0x217   :  { %v1033_v50 = vadd.f32 %v2548_v46, %v2373_v47  ;;  %v2820_v46 = vld [vmem:[%s3880_s9 + $0x44] ss:$28 sps:$4 sm:$0xff]  }
 0x218   :  { %v2550_v48 = vpop.f32.mrf.mxu1 }
 0x219   :  { %v2551_v49 = vadd.f32 %v2550_v48, %v2549_v45  ;;  %v2812_v45 = vld [vmem:[%s3880_s9 + $0x78] ss:$28 sps:$4 sm:$0xff]   ;;  %v2826_v48 = vld [vmem:[%s3880_s9 + $0xc] ss:$28 sps:$4 sm:$0xff]  }
 0x21b   :  { %v1036_v51 = vadd.f32 %v2551_v49, %v2373_v47  ;;  %v2818_v47 = vld [vmem:[%s3880_s9 + $0x40] ss:$28 sps:$4 sm:$0xff]   ;;  %v2824_v49 = vld [vmem:[%s3880_s9 + $0x8] ss:$28 sps:$4 sm:$0xff]  }
 0x21d   :  { %v1039_v52 = vpack.c.bf16 %v1036_v51, %v1033_v50  ;;  %v2832_v50 = vld [vmem:[%s3880_s9 + $0x354] ss:$28 sps:$4 sm:$0xff]  }
 0x21e   :  { %v2830_v51 = vld [vmem:[%s3880_s9 + $0x350] ss:$28 sps:$4 sm:$0xff]  }
 0x21f   :  { %v1040_v54 = vmax.bf16 %v3017_v12, %v1039_v52  ;;  %v2838_v52 = vld [vmem:[%s3880_s9 + $0x31c] ss:$28 sps:$4 sm:$0xff]  }
 0x221   :  { %2585 = vmatmul.mubr.msk.bf16.vlgmr.msra.gmra.mxu1 %vm1072_vm2, %v1040_v54  ;;  %v2844_v54 = vld [vmem:[%s3880_s9 + $0x2e4] ss:$28 sps:$4 sm:$0xff]  }
 0x222   :  { %1181 = vmatpush1.bf16.msra.mxu1 %v2770_v53  ;;  %1202 = vmatprep.mubr.bf16.mxu1 %v3017_v12  ;;  %v2836_v53 = vld [vmem:[%s3880_s9 + $0x318] ss:$28 sps:$4 sm:$0xff]  }
 0x223   :  { %1182 = vmatprep.subr.bf16.mxu1 %v2775_v55  ;;  %v2842_v55 = vld [vmem:[%s3880_s9 + $0x2e0] ss:$28 sps:$4 sm:$0xff]  }
 0x226   :  { %1183 = vmatpush1.bf16.msra.mxu1 %v2773_v56  ;;  %v2850_v56 = vld [vmem:[%s3880_s9 + $0x2ac] ss:$28 sps:$4 sm:$0xff]  }
 0x227   :  { %1184 = vmatprep.subr.bf16.mxu1 %v2778_v57  ;;  %v2848_v57 = vld [vmem:[%s3880_s9 + $0x2a8] ss:$28 sps:$4 sm:$0xff]  }
 0x22a   :  { %1185 = vmatpush1.bf16.msra.mxu1 %v2776_v58  ;;  %v2856_v58 = vld [vmem:[%s3880_s9 + $0x274] ss:$28 sps:$4 sm:$0xff]  }
 0x22b   :  { %2001 = vmatprep.subr.bf16.mxu1 %v2784_v62  ;;  %v2862_v62 = vld [vmem:[%s3880_s9 + $0x23c] ss:$28 sps:$4 sm:$0xff]  }
 0x2e1   :  { %v1110_v26 = vpop.f32.mrf.mxu1 }
 0x2e2   :  { %v1111_v30 = vadd.f32 %v2390_v27, %v1110_v26 }
 0x2e3   :  { %v2586_v28 = vpop.f32.mrf.mxu1 }
 0x2e4   :  { %v2875_v28 = vld [vmem:[%s3880_s9 + $0x198] ss:$28 sps:$4 sm:$0xff]  }
 0x2e5   :  { %v1113_v29 = vpop.f32.mrf.mxu1 }
 0x2e6   :  { %v1114_v31 = vadd.f32 %v2390_v27, %v1113_v29  ;;  %v2879_v29 = vld [vmem:[%s3880_s9 + $0x1a0] ss:$28 sps:$4 sm:$0xff]  }
 0x2e7   :  { %v2587_v32 = vpop.f32.mrf.mxu1 }
 0x2e8   :  { %v1117_v33 = vpack.c.bf16 %v1114_v31, %v1111_v30  ;;  %v2882_v31 = vld [vmem:[%s3880_s9 + $0x164] ss:$28 sps:$4 sm:$0xff]  }
 0x2e9   :  { %v2883_v32 = vld [vmem:[%s3880_s9 + $0x328] ss:$28 sps:$4 sm:$0xff]  }
 0x2ea   :  { %v1118_v35 = vmax.bf16 %v3017_v12, %v1117_v33  ;;  %v2884_v33 = vld [vmem:[%s3880_s9 + $0x168] ss:$28 sps:$4 sm:$0xff]  }
 0x2ec   :  { %2401 = vmatmul.mubr.msk.bf16.vlgmr.msra.gmra.mxu1 %vm1072_vm2, %v1118_v35  ;;  %v2888_v35 = vld [vmem:[%s3880_s9 + $0x2f0] ss:$28 sps:$4 sm:$0xff]  }
 0x2ed   :  { %2002 = vmatpush1.bf16.msra.mxu1 %v2782_v34  ;;  %v2887_v34 = vld [vmem:[%s3880_s9 + $0x12c] ss:$28 sps:$4 sm:$0xff]  }
 0x2ee   :  { %2003 = vmatprep.subr.bf16.mxu1 %v2790_v36  ;;  %v2885_v36 = vld [vmem:[%s3880_s9 + $0x128] ss:$28 sps:$4 sm:$0xff]  }
 0x2f1   :  { %2004 = vmatpush1.bf16.msra.mxu1 %v2788_v37  ;;  %v2889_v37 = vld [vmem:[%s3880_s9 + $0x130] ss:$28 sps:$4 sm:$0xff]  }
 0x2f2   :  { %2005 = vmatprep.subr.bf16.mxu1 %v2796_v38  ;;  %v2892_v38 = vld [vmem:[%s3880_s9 + $0xf4] ss:$28 sps:$4 sm:$0xff]  }
 0x2f5   :  { %2006 = vmatpush1.bf16.msra.mxu1 %v2794_v39  ;;  %v2893_v39 = vld [vmem:[%s3880_s9 + $0x2b8] ss:$28 sps:$4 sm:$0xff]  }
 0x2f6   :  { %2007 = vmatprep.subr.bf16.mxu1 %v2802_v40  ;;  %v2890_v40 = vld [vmem:[%s3880_s9 + $0xf0] ss:$28 sps:$4 sm:$0xff]  }
 0x2f9   :  { %2008 = vmatpush1.bf16.msra.mxu1 %v2800_v41  ;;  %v2894_v41 = vld [vmem:[%s3880_s9 + $0xf8] ss:$28 sps:$4 sm:$0xff]  }
 0x2fa   :  { %2009 = vmatprep.subr.bf16.mxu1 %v2808_v42  ;;  %v2897_v42 = vld [vmem:[%s3880_s9 + $0xbc] ss:$28 sps:$4 sm:$0xff]  }
 0x2fd   :  { %2010 = vmatpush1.bf16.msra.mxu1 %v2806_v43  ;;  %v2898_v43 = vld [vmem:[%s3880_s9 + $0x280] ss:$28 sps:$4 sm:$0xff]  }
 0x2fe   :  { %2011 = vmatprep.subr.bf16.mxu1 %v2814_v44  ;;  %v2895_v44 = vld [vmem:[%s3880_s9 + $0xb8] ss:$28 sps:$4 sm:$0xff]  }
 0x301   :  { %2012 = vmatpush1.bf16.msra.mxu1 %v2812_v45  ;;  %v2899_v45 = vld [vmem:[%s3880_s9 + $0xc0] ss:$28 sps:$4 sm:$0xff]  }
 0x302   :  { %2013 = vmatprep.subr.bf16.mxu1 %v2820_v46  ;;  %v2902_v46 = vld [vmem:[%s3880_s9 + $0x84] ss:$28 sps:$4 sm:$0xff]  }
 0x305   :  { %2014 = vmatpush1.bf16.msra.mxu1 %v2818_v47  ;;  %v2903_v47 = vld [vmem:[%s3880_s9 + $0x248] ss:$28 sps:$4 sm:$0xff]  }
 0x306   :  { %2015 = vmatprep.subr.bf16.mxu1 %v2826_v48  ;;  %v2900_v48 = vld [vmem:[%s3880_s9 + $0x80] ss:$28 sps:$4 sm:$0xff]  }
 0x309   :  { %2016 = vmatpush1.bf16.msra.mxu1 %v2824_v49  ;;  %v2904_v49 = vld [vmem:[%s3880_s9 + $0x88] ss:$28 sps:$4 sm:$0xff]  }
 0x30a   :  { %2017 = vmatprep.subr.bf16.mxu1 %v2832_v50  ;;  %v2907_v50 = vld [vmem:[%s3880_s9 + $0x4c] ss:$28 sps:$4 sm:$0xff]  }
 0x30d   :  { %2018 = vmatpush2.bf16.msra.mxu1 %v2830_v51  ;;  %v2908_v51 = vld [vmem:[%s3880_s9 + $0x210] ss:$28 sps:$4 sm:$0xff]  }
 0x30e   :  { %2019 = vmatprep.subr.bf16.mxu1 %v2838_v52  ;;  %v2905_v52 = vld [vmem:[%s3880_s9 + $0x48] ss:$28 sps:$4 sm:$0xff]  }
 0x311   :  { %2020 = vmatpush2.bf16.msra.mxu1 %v2836_v53  ;;  %v2909_v53 = vld [vmem:[%s3880_s9 + $0x50] ss:$28 sps:$4 sm:$0xff]  }
 0x312   :  { %2021 = vmatprep.subr.bf16.mxu1 %v2844_v54  ;;  %v2912_v54 = vld [vmem:[%s3880_s9 + $0x14] ss:$28 sps:$4 sm:$0xff]  }
 0x315   :  { %2022 = vmatpush2.bf16.msra.mxu1 %v2842_v55  ;;  %v2913_v55 = vld [vmem:[%s3880_s9 + $0x1d8] ss:$28 sps:$4 sm:$0xff]  }
 0x316   :  { %2023 = vmatprep.subr.bf16.mxu1 %v2850_v56  ;;  %v2910_v56 = vld [vmem:[%s3880_s9 + $0x10] ss:$28 sps:$4 sm:$0xff]  }
 0x319   :  { %2024 = vmatpush2.bf16.msra.mxu1 %v2848_v57  ;;  %v2914_v57 = vld [vmem:[%s3880_s9 + $0x18] ss:$28 sps:$4 sm:$0xff]  }
 0x31a   :  { %2025 = vmatprep.subr.bf16.mxu1 %v2856_v58  ;;  %v2917_v58 = vld [vmem:[%s3880_s9 + $0x35c] ss:$28 sps:$4 sm:$0xff]  }
 0x31d   :  { %2026 = vmatpush2.bf16.msra.mxu1 %v2854_v59  ;;  %v2915_v59 = vld [vmem:[%s3880_s9 + $0x358] ss:$28 sps:$4 sm:$0xff]  }
 0x31e   :  { %2027 = vmatprep.subr.bf16.mxu1 %v2862_v62  ;;  %v2918_v62 = vld [vmem:[%s3880_s9 + $0x320] ss:$28 sps:$4 sm:$0xff]  }
 0x321   :  { %2028 = vmatpush2.bf16.msra.mxu1 %v2860_v1  ;;  %v2921_v1 = vld [vmem:[%s3880_s9 + $0x2e8] ss:$28 sps:$4 sm:$0xff]  }
 0x322   :  { %2029 = vmatprep.subr.bf16.mxu1 %v2868_v4  ;;  %v2924_v4 = vld [vmem:[%s3880_s9 + $0x2b0] ss:$28 sps:$4 sm:$0xff]  }
 0x325   :  { %2030 = vmatpush2.bf16.msra.mxu1 %v2866_v6  ;;  %v2927_v6 = vld [vmem:[%s3880_s9 + $0x278] ss:$28 sps:$4 sm:$0xff]  }
 0x326   :  { %2031 = vmatprep.subr.bf16.mxu1 %v2874_v8  ;;  %v2930_v8 = vld [vmem:[%s3880_s9 + $0x240] ss:$28 sps:$4 sm:$0xff]  }
 0x329   :  { %2032 = vmatpush2.bf16.msra.mxu1 %v2872_v10  ;;  %v2933_v10 = vld [vmem:[%s3880_s9 + $0x208] ss:$28 sps:$4 sm:$0xff]  }
 0x32a   :  { %2556 = vmatprep.subr.bf16.mxu1 %v2878_v13  ;;  %v2936_v13 = vld [vmem:[%s3880_s9 + $0x1d0] ss:$28 sps:$4 sm:$0xff]  }
 0x3ac   :  { %v1204_v15 = vpop.f32.mrf.mxu1 }
 0x3ad   :  { %v1205_v21 = vadd.f32 %v1204_v15, %v1130_v16  ;;  %v3853_v15 = vld [vmem:[%s3881_s10] sm:$0x7f] }
 0x3ae   :  { %v1206_v17 = vpop.f32.mrf.mxu1 }
 0x3af   :  { %v1207_v23 = vadd.f32 %v1206_v17, %v1134_v18  ;;  %v1350_v17 = vrot.slane %v3853_v15, %v3450_v63 }
 0x3b0   :  { %v1208_v19 = vpop.f32.mrf.mxu1 }
 0x3b1   :  { %v1209_v20 = vadd.f32 %v1208_v19, %v1130_v16  ;;  %v1361_v16 = vsub.s32 3, %v3447_v60  ;;  %v1354_v19 = vrot.slane %v3853_v15, %v3456_v3 }
 0x3b2   :  { %v1210_v22 = vpop.f32.mrf.mxu1 }
 0x3b3   :  { %v1211_v24 = vadd.f32 %v1210_v22, %v1134_v18  ;;  %v1213_v25 = vpack.c.bf16 %v1209_v20, %v1205_v21  ;;  %v1358_v18 = vrot.slane %v3853_v15, %v1357_v14  ;;  %v1362_v20 = vrot.slane %v3853_v15, %v1361_v16 }
 0x3b5   :  { %v1214_v26 = vpack.c.bf16 %v1211_v24, %v1207_v23  ;;  %v3711_v30 = vmax.bf16 %v3017_v12, %v1213_v25 }
 0x3b7   :  { %v1216_v27 = vmax.bf16 %v3017_v12, %v1214_v26  ;;  %v2880_v12 = vld [vmem:[%s3880_s9 + $0x160] ss:$28 sps:$4 sm:$0xff]   ;;  %s3020_s9 = smov [#allocation2]  }
 0x3b8   :  { %s2256_s10 = sshll.u32 %s3020_s9, 4  ;;  %s2257_s10 = int_to_ptr.vmem [resolvable:$true] %s2256_s10 }
 0x3b9   :  { %1990 = vmatprep.mubr.bf16.mxu0 %v1216_v27  ;;  %2033 = vmatprep.mubr.bf16.mxu1 %v1216_v27  ;;  %s2995_s13 = scalar_lea.vmem %s2257_s10, 896  ;;  %p3000_p1 = scmp.lt.s32.totalorder %s2257_s10, %s2257_s10 }
 0x3ba   :  { %1991 = vmatmul.mubr.bf16.vlgmr.msra.gmra.mxu0 %v3711_v30  ;;  %2034 = vmatmul.mubr.bf16.vlgmr.msra.gmra.mxu1 %v3711_v30  ;;  %p2996_p0 = scmp.ne.s32.totalorder %s2257_s10, %s2995_s13  ;;  %p3001_p2 = scmp.lt.s32.totalorder %s2995_s13, %s2995_s13 }
 0x3bb   :  { %2045 = vmatpush1.bf16.msra.mxu0 %v2875_v28  ;;  %2557 = vmatpush3.bf16.msra.mxu1 %v2879_v29 }
 0x3bc   :  { %2076 = vmatprep.mubr.bf16.mxu0 %v1216_v27  ;;  %2119 = vmatprep.mubr.bf16.mxu1 %v1216_v27  ;;  %p3002_p3 = por %p3001_p2, %p3000_p1 }
 0x3bd   :  { %2046 = vmatprep.subr.bf16.mxu0 %v2882_v31  ;;  %2558 = vmatprep.subr.bf16.mxu1 %v2883_v32 }
 0x3be   :  { %p3003_p4 = pnand %p3002_p3, %p2996_p0 }
 0x3bf   :  { %2047 = vmatpush1.bf16.msra.mxu0 %v2880_v12  ;;  %2559 = vmatpush3.bf16.msra.mxu1 %v2884_v33 }
 0x3c0   :  { %2048 = vmatprep.subr.bf16.mxu0 %v2887_v34  ;;  %2560 = vmatprep.subr.bf16.mxu1 %v2888_v35 }
 0x3c3   :  { %2049 = vmatpush1.bf16.msra.mxu0 %v2885_v36  ;;  %2561 = vmatpush3.bf16.msra.mxu1 %v2889_v37 }
 0x3c4   :  { %2050 = vmatprep.subr.bf16.mxu0 %v2892_v38  ;;  %2562 = vmatprep.subr.bf16.mxu1 %v2893_v39 }
 0x3c7   :  { %2051 = vmatpush1.bf16.msra.mxu0 %v2890_v40  ;;  %2563 = vmatpush3.bf16.msra.mxu1 %v2894_v41 }
 0x3c8   :  { %2052 = vmatprep.subr.bf16.mxu0 %v2897_v42  ;;  %2564 = vmatprep.subr.bf16.mxu1 %v2898_v43 }
 0x3cb   :  { %2053 = vmatpush1.bf16.msra.mxu0 %v2895_v44  ;;  %2565 = vmatpush3.bf16.msra.mxu1 %v2899_v45 }
 0x3cc   :  { %2054 = vmatprep.subr.bf16.mxu0 %v2902_v46  ;;  %2566 = vmatprep.subr.bf16.mxu1 %v2903_v47 }
 0x3cf   :  { %2055 = vmatpush1.bf16.msra.mxu0 %v2900_v48  ;;  %2567 = vmatpush3.bf16.msra.mxu1 %v2904_v49 }
 0x3d0   :  { %2056 = vmatprep.subr.bf16.mxu0 %v2907_v50  ;;  %2568 = vmatprep.subr.bf16.mxu1 %v2908_v51 }
 0x3d3   :  { %2057 = vmatpush1.bf16.msra.mxu0 %v2905_v52  ;;  %2569 = vmatpush3.bf16.msra.mxu1 %v2909_v53 }
 0x3d4   :  { %2058 = vmatprep.subr.bf16.mxu0 %v2912_v54  ;;  %2570 = vmatprep.subr.bf16.mxu1 %v2913_v55 }
 0x3d7   :  { %2059 = vmatpush1.bf16.msra.mxu0 %v2910_v56  ;;  %2571 = vmatpush3.bf16.msra.mxu1 %v2914_v57 }
 0x3d8   :  { %2060 = vmatprep.subr.bf16.mxu0 %v2917_v58 }
 0x3da   :  { %2120 = vmatmul.mubr.bf16.vlgmr.msra.gmra.mxu1 %v3711_v30 }
 0x3db   :  { %2061 = vmatpush2.bf16.msra.mxu0 %v2915_v59 }
 0x3dc   :  { %2062 = vmatprep.subr.bf16.mxu0 %v2920_v61 }
 0x3df   :  { %2063 = vmatpush2.bf16.msra.mxu0 %v2918_v62 }
 0x3e0   :  { %2064 = vmatprep.subr.bf16.mxu0 %v2923_v0 }
 0x3e3   :  { %2065 = vmatpush2.bf16.msra.mxu0 %v2921_v1 }
 0x3e4   :  { %2066 = vmatprep.subr.bf16.mxu0 %v2926_v2 }
 0x3e7   :  { %2067 = vmatpush2.bf16.msra.mxu0 %v2924_v4 }
 0x3e8   :  { %2068 = vmatprep.subr.bf16.mxu0 %v2929_v5  ;;  %v1373_v5 = vsub.s32 6, %v3447_v60 }
 0x3eb   :  { %2069 = vmatpush2.bf16.msra.mxu0 %v2927_v6 }
 0x3ec   :  { %2070 = vmatprep.subr.bf16.mxu0 %v2932_v7  ;;  %v1374_v7 = vrot.slane %v3853_v15, %v1373_v5 }
 0x3ef   :  { %2071 = vmatpush2.bf16.msra.mxu0 %v2930_v8 }
 0x3f0   :  { %2072 = vmatprep.subr.bf16.mxu0 %v2935_v9 }
 0x3f3   :  { %2073 = vmatpush2.bf16.msra.mxu0 %v2933_v10 }
 0x3f4   :  { %2074 = vmatprep.subr.bf16.mxu0 %v2938_v11 }
 0x3f7   :  { %2075 = vmatpush2.bf16.msra.mxu0 %v2936_v13 }
 0x3fa   :  { %2077 = vmatmul.mubr.bf16.vlgmr.msra.gmra.mxu0 %v3711_v30 }
 0x47a   :  { %v1992_v21 = vpop.f32.mrf.mxu0  ;;  %v2035_v22 = vpop.f32.mrf.mxu1 }
 0x47b   :  { %v1993_v23 = vadd.f32 %v1992_v21, %v1350_v17  ;;  %v2036_v24 = vadd.f32 %v2035_v22, %v1358_v18 }
 0x47c   :  { %v1994_v25 = vpop.f32.mrf.mxu0  ;;  %v2037_v26 = vpop.f32.mrf.mxu1 }
 0x47d   :  { %v2128_v27 = vsub.f32 0.0, %v1993_v23  ;;  %v2130_v28 = vsub.f32 0.0, %v2036_v24  ;;  %v1995_v29 = vadd.f32 %v1994_v25, %v1354_v19  ;;  %v2038_v30 = vadd.f32 %v2037_v26, %v1362_v20 }
 0x47e   :  { %v1996_v31 = vpop.f32.mrf.mxu0  ;;  %v2039_v32 = vpop.f32.mrf.mxu1 }
 0x47f   :  { %v2142_v63 = vmul.f32 1.442695, %v2128_v27  ;;  %v2146_v12 = vmul.f32 1.442695, %v2130_v28  ;;  %v2129_v33 = vsub.f32 0.0, %v1995_v29  ;;  %v2131_v34 = vsub.f32 0.0, %v2038_v30 }
 0x480   :  { %v1997_v35 = vadd.f32 %v1996_v31, %v1350_v17  ;;  %v2040_v3 = vadd.f32 %v2039_v32, %v1358_v18  ;;  %v1998_v36 = vpop.f32.mrf.mxu0  ;;  %v2041_v37 = vpop.f32.mrf.mxu1 }
 0x481   :  { %2939 = vpow2.f32 %v2142_v63  ;;  %v2144_v38 = vmul.f32 1.442695, %v2129_v33  ;;  %v2148_v39 = vmul.f32 1.442695, %v2131_v34  ;;  %v1999_v40 = vadd.f32 %v1998_v36, %v1354_v19 }
 0x482   :  { %2941 = vpow2.f32 %v2146_v12  ;;  %v2135_v41 = vsub.f32 0.0, %v1997_v35  ;;  %v2137_v42 = vsub.f32 0.0, %v2040_v3  ;;  %v2042_v43 = vadd.f32 %v2041_v37, %v1362_v20 }
 0x483   :  { %2943 = vpow2.f32 %v2144_v38  ;;  %v2136_v44 = vsub.f32 0.0, %v1999_v40  ;;  %v1365_v33 = vsub.s32 4, %v3447_v60  ;;  %v1369_v34 = vsub.s32 5, %v3447_v60 }
 0x484   :  { %2945 = vpow2.f32 %v2148_v39  ;;  %v2156_v45 = vmul.f32 1.442695, %v2135_v41  ;;  %v2160_v46 = vmul.f32 1.442695, %v2137_v42  ;;  %v2138_v47 = vsub.f32 0.0, %v2042_v43 }
 0x485   :  { %v2158_v48 = vmul.f32 1.442695, %v2136_v44  ;;  %v1366_v36 = vrot.slane %v3853_v15, %v1365_v33  ;;  %v1370_v37 = vrot.slane %v3853_v15, %v1369_v34 }
 0x486   :  { %2947 = vpow2.f32 %v2156_v45  ;;  %v2162_v49 = vmul.f32 1.442695, %v2138_v47 }
 0x487   :  { %2949 = vpow2.f32 %v2160_v46 }
 0x488   :  { %2951 = vpow2.f32 %v2158_v48 }
 0x489   :  { %2953 = vpow2.f32 %v2162_v49 }
 0x48e   :  { %v2940_v50 = vpop.eup %2939 }
 0x48f   :  { %v2942_v51 = vpop.eup %2941  ;;  %v2170_v52 = vadd.f32 1.0, %v2940_v50 }
 0x490   :  { %v2944_v53 = vpop.eup %2943  ;;  %v2172_v54 = vadd.f32 1.0, %v2942_v51 }
 0x491   :  { %v2946_v55 = vpop.eup %2945  ;;  %2955 = vrcp.f32 %v2170_v52  ;;  %v2171_v56 = vadd.f32 1.0, %v2944_v53 }
 0x492   :  { %2957 = vrcp.f32 %v2172_v54  ;;  %v2173_v57 = vadd.f32 1.0, %v2946_v55 }
 0x493   :  { %v2948_v58 = vpop.eup %2947  ;;  %2959 = vrcp.f32 %v2171_v56 }
 0x494   :  { %v2950_v59 = vpop.eup %2949  ;;  %2961 = vrcp.f32 %v2173_v57  ;;  %v2177_v61 = vadd.f32 1.0, %v2948_v58 }
 0x495   :  { %v2952_v62 = vpop.eup %2951  ;;  %v2179_v0 = vadd.f32 1.0, %v2950_v59 }
 0x496   :  { %v2954_v1 = vpop.eup %2953  ;;  %2963 = vrcp.f32 %v2177_v61  ;;  %v2178_v2 = vadd.f32 1.0, %v2952_v62 }
 0x497   :  { %2965 = vrcp.f32 %v2179_v0  ;;  %v2180_v4 = vadd.f32 1.0, %v2954_v1 }
 0x498   :  { %2967 = vrcp.f32 %v2178_v2 }
 0x499   :  { %2969 = vrcp.f32 %v2180_v4 }
 0x49a   :  { %v2572_v6 = vpop.f32.mrf.mxu1 }
 0x49c   :  { %v2573_v8 = vpop.f32.mrf.mxu1 }
 0x49d   :  { %v2574_v9 = vadd.f32 %v2573_v8, %v2572_v6 }
 0x49e   :  { %v2956_v10 = vpop.eup %2955  ;;  %v2575_v11 = vpop.f32.mrf.mxu1 }
 0x49f   :  { %v2958_v13 = vpop.eup %2957  ;;  %v2122_v14 = vadd.f32 %v2574_v9, %v1374_v7 }
 0x4a0   :  { %v2960_v16 = vpop.eup %2959  ;;  %v2576_v17 = vpop.f32.mrf.mxu1 }
 0x4a1   :  { %v2962_v18 = vpop.eup %2961  ;;  %v2522_v19 = vpack.c.bf16 %v2960_v16, %v2956_v10  ;;  %v2134_v20 = vsub.f32 0.0, %v2122_v14  ;;  %v2577_v21 = vadd.f32 %v2576_v17, %v2575_v11 }
 0x4a2   :  { %v2523_v22 = vpack.c.bf16 %v2962_v18, %v2958_v13 }
 0x4a3   :  { %v2964_v23 = vpop.eup %2963  ;;  %2242 = vst [vmem:[#allocation2] sm:$0xff] %v2522_v19  ;;  %v2154_v24 = vmul.f32 1.442695, %v2134_v20  ;;  %v2125_v25 = vadd.f32 %v2577_v21, %v1374_v7 }
 0x4a4   :  { %v2966_v26 = vpop.eup %2965  ;;  %2243 = vst [vmem:[#allocation2 + $0x8] sm:$0xff] %v2523_v22 }
 0x4a5   :  { %v2968_v27 = vpop.eup %2967  ;;  %2971 = vpow2.f32 %v2154_v24  ;;  %v2141_v28 = vsub.f32 0.0, %v2125_v25 }
 0x4a6   :  { %v2970_v29 = vpop.eup %2969  ;;  %v2526_v30 = vpack.c.bf16 %v2968_v27, %v2964_v23 }
 0x4a7   :  { %v2527_v31 = vpack.c.bf16 %v2970_v29, %v2966_v26  ;;  %v2168_v32 = vmul.f32 1.442695, %v2141_v28 }
 0x4a8   :  { %2247 = vst [vmem:[#allocation2 + $0x1c] sm:$0xff] %v2526_v30 }
 0x4a9   :  { %2248 = vst [vmem:[#allocation2 + $0x24] sm:$0xff] %v2527_v31  ;;  %2973 = vpow2.f32 %v2168_v32 }
 0x4b2   :  { %v2972_v63 = vpop.eup %2971 }
 0x4b3   :  { %v2176_v12 = vadd.f32 1.0, %v2972_v63 }
 0x4b5   :  { %2975 = vrcp.f32 %v2176_v12 }
 0x4b6   :  { %v2974_v35 = vpop.eup %2973 }
 0x4b7   :  { %v2183_v3 = vadd.f32 1.0, %v2974_v35 }
 0x4b9   :  { %2977 = vrcp.f32 %v2183_v3 }
 0x4ba   :  { %v2078_v38 = vpop.f32.mrf.mxu0 }
 0x4bb   :  { %v2079_v39 = vadd.f32 %v2078_v38, %v1366_v36 }
 0x4bc   :  { %v2080_v40 = vpop.f32.mrf.mxu0 }
 0x4bd   :  { %v2132_v41 = vsub.f32 0.0, %v2079_v39  ;;  %v2081_v42 = vadd.f32 %v2080_v40, %v1370_v37 }
 0x4be   :  { %v2082_v43 = vpop.f32.mrf.mxu0 }
 0x4bf   :  { %v2150_v44 = vmul.f32 1.442695, %v2132_v41  ;;  %v2133_v45 = vsub.f32 0.0, %v2081_v42  ;;  %v2083_v46 = vadd.f32 %v2082_v43, %v1366_v36 }
 0x4c0   :  { %v2084_v47 = vpop.f32.mrf.mxu0 }
 0x4c1   :  { %2979 = vpow2.f32 %v2150_v44  ;;  %v2152_v48 = vmul.f32 1.442695, %v2133_v45  ;;  %v2139_v60 = vsub.f32 0.0, %v2083_v46  ;;  %v2085_v49 = vadd.f32 %v2084_v47, %v1370_v37 }
 0x4c2   :  { %v2976_v50 = vpop.eup %2975 }
 0x4c3   :  { %v2525_v51 = vpack.c.bf16 %v2976_v50, %v2976_v50  ;;  %2981 = vpow2.f32 %v2152_v48  ;;  %v2164_v52 = vmul.f32 1.442695, %v2139_v60  ;;  %v2140_v15 = vsub.f32 0.0, %v2085_v49 }
 0x4c5   :  { %2246 = vst.msk [vmem:[#allocation2 + $0x18] sm:$0xf] %vm2245_vm3, %v2525_v51  ;;  %2983 = vpow2.f32 %v2164_v52  ;;  %v2166_v53 = vmul.f32 1.442695, %v2140_v15 }
 0x4c6   :  { %v2978_v54 = vpop.eup %2977 }
 0x4c7   :  { %v2529_v55 = vpack.c.bf16 %v2978_v54, %v2978_v54  ;;  %2985 = vpow2.f32 %v2166_v53 }
 0x4c9   :  { %2250 = vst.msk [vmem:[#allocation2 + $0x34] sm:$0xf] %vm2245_vm3, %v2529_v55 }
 0x4ce   :  { %v2980_v56 = vpop.eup %2979 }
 0x4cf   :  { %v2174_v57 = vadd.f32 1.0, %v2980_v56 }
 0x4d0   :  { %v2982_v58 = vpop.eup %2981 }
 0x4d1   :  { %v2175_v59 = vadd.f32 1.0, %v2982_v58  ;;  %2987 = vrcp.f32 %v2174_v57 }
 0x4d2   :  { %v2984_v61 = vpop.eup %2983 }
 0x4d3   :  { %2989 = vrcp.f32 %v2175_v59  ;;  %v2181_v62 = vadd.f32 1.0, %v2984_v61 }
 0x4d4   :  { %v2986_v0 = vpop.eup %2985 }
 0x4d5   :  { %v2182_v1 = vadd.f32 1.0, %v2986_v0  ;;  %2991 = vrcp.f32 %v2181_v62 }
 0x4d7   :  { %2993 = vrcp.f32 %v2182_v1 }
 0x4de   :  { %v2988_v2 = vpop.eup %2987 }
 0x4e0   :  { %v2990_v4 = vpop.eup %2989 }
 0x4e1   :  { %v2524_v5 = vpack.c.bf16 %v2990_v4, %v2988_v2 }
 0x4e2   :  { %v2992_v6 = vpop.eup %2991 }
 0x4e3   :  { %2244 = vst [vmem:[#allocation2 + $0x10] sm:$0xff] %v2524_v5 }
 0x4e4   :  { %v2994_v7 = vpop.eup %2993 }
 0x4e5   :  { %v2528_v8 = vpack.c.bf16 %v2994_v7, %v2992_v6 }
 0x4e7   :  { %2249 = vst [vmem:[#allocation2 + $0x2c] sm:$0xff] %v2528_v8 }
 0x4e8   :  { %3006 = shalt.err (!%p3003_p4)
}
 0x4e9   :  { %s3021_s14 = smov 448   ;;  %s3022_s15 = smov 28  }
 0x4ea   :  { %2262 = dma.vmem_to_hbm [thread:$0]  %s2257_s10, 896, %s3882_s11, [#allocation3], %s3021_s14, %s3021_s14, %s3022_s15  }
 0x4eb   :  { %3015 = dma.done.wait [#allocation3], 896  }
 0x4ec   :  { %3016 = vsyncadd [#allocation3], 4294966400 }
 0x4ed   :  { %2266 = vsyncpa [#allocation3], 1 }

</bundles_post_ra>
